<compile_context>
chip_gen: v5e
topology: v5e:2x2
jax: 0.10.0
libtpu: 0.0.40
codegen_flags: <defaults>
</compile_context>

<pallas_src>
import functools

import jax
import jax.numpy as jnp
import numpy as np
from jax.experimental import pallas as pl
from jax.experimental.pallas import tpu as pltpu


def _round_up(x, m):
    return ((x + m - 1) // m) * m


# ---------------------------------------------------------------------------
# Pass 1: per-edge transform.
#   edge_w[e, :] = exp(-leakyrelu(score_e)) * (w1_aug @ edge_h_e)
# Column `out_f` of the augmented product is exactly 1 (constant-1 feature), so
# that column of edge_w carries edge_e itself (the row-sum numerator); column
# `out_f + 1` carries the (ignored) score product.
# ---------------------------------------------------------------------------
def edge_transform_kernel(edge_h_ref, w1t_ref, ew_ref, *, alpha, score_col):
    edge_m = jnp.dot(edge_h_ref[...], w1t_ref[...],
                     preferred_element_type=jnp.float32)        # [TE, Dout_p]
    score = edge_m[:, score_col:score_col + 1]                  # [TE, 1]
    powers = -jnp.where(score > 0, score, alpha * score)        # -leakyrelu
    powers = jnp.minimum(powers, 80.0)                          # overflow insurance
    edge_e = jnp.exp(powers)                                    # [TE, 1] (EUP)
    ew_ref[...] = (edge_e * edge_m).astype(ew_ref.dtype)        # [TE, Dout_p]


# ---------------------------------------------------------------------------
# Pass 2: segmented one-hot scatter.  1-D grid over edge tiles of the
# destination-sorted, group-padded edge list; tile_node_ref (scalar prefetch)
# maps each edge tile to its unique destination node tile.
# ---------------------------------------------------------------------------
def scatter_kernel(tile_node_ref, head_ref, ew_ref, o_ref, acc_ref, *,
                   tn, out_f, concat):
    w = pl.program_id(0)
    nsteps = pl.num_programs(0)
    n_cur = tile_node_ref[w]
    prev_n = tile_node_ref[jnp.maximum(w - 1, 0)]
    next_n = tile_node_ref[jnp.minimum(w + 1, nsteps - 1)]
    is_first = jnp.logical_or(w == 0, prev_n != n_cur)
    is_last = jnp.logical_or(w == nsteps - 1, next_n != n_cur)

    @pl.when(is_first)
    def _():
        acc_ref[...] = jnp.zeros_like(acc_ref)

    te = head_ref.shape[1]
    row_ids = n_cur * tn + jax.lax.broadcasted_iota(jnp.int32, (tn, te), 0)
    # compare + direct bool->bf16 cast (padded edges have head = -1 -> all-zero col)
    one_hot = (head_ref[...] == row_ids).astype(jnp.bfloat16)    # [TN, TE]
    acc_ref[...] += jnp.dot(one_hot, ew_ref[...],
                            preferred_element_type=jnp.float32)  # [TN, Dout_p]

    @pl.when(is_last)
    def _():
        acc = acc_ref[...]
        rowsum = acc[:, out_f:out_f + 1]                         # [TN, 1]
        rowsum = jnp.where(rowsum == 0.0, 1e-12, rowsum)
        h = acc / rowsum                                         # exact divide
        if concat:
            h = jnp.where(h > 0, h, jnp.exp(h) - 1.0)            # ELU
        o_ref[...] = h.astype(o_ref.dtype)


def sp_graph_attention_forward(x, entity_list, edge_embed,
                               entity_list_nhop, edge_embed_nhop,
                               w1, w2, alpha, concat=True,
                               tile_n=512, tile_e=512):
    N, in_f = x.shape
    out_f = w1.shape[0]
    nrela = edge_embed.shape[1]

    # --- concatenate 1-hop and n-hop edges (plain-JAX glue) ----------------
    e_all = jnp.concatenate([entity_list, entity_list_nhop], axis=1)   # [2, E]
    r_all = jnp.concatenate([edge_embed, edge_embed_nhop], axis=0)     # [E, nrela]
    E = e_all.shape[1]

    # --- tile sizes --------------------------------------------------------
    TN = min(tile_n, _round_up(max(N, 1), 8))
    TE = min(tile_e, _round_up(max(E, 1), 128))
    T_n = (N + TN - 1) // TN
    Np = T_n * TN
    Din = 2 * in_f + nrela
    Din_p = _round_up(Din + 1, 128)        # +1: constant-1 feature (rowsum column)
    Dout_p = _round_up(out_f + 2, 128)     # +2: rowsum column + score column

    # --- sort edges by destination node, pad each node-tile group to a
    #     multiple of TE -> every edge tile targets exactly one node tile ----
    heads = e_all[0].astype(jnp.int32)
    tails = e_all[1].astype(jnp.int32)
    order = jnp.argsort(heads)
    heads_s, tails_s, rel_s = heads[order], tails[order], r_all[order]

    g = heads_s // TN                                            # node-tile per edge
    counts = jnp.bincount(g, length=T_n)                         # [T_n]
    group_start = jnp.concatenate(
        [jnp.zeros((1,), counts.dtype), jnp.cumsum(counts)[:-1]])
    padded = jnp.maximum((counts + TE - 1) // TE, 1) * TE        # >= TE per group
    pad_start = jnp.concatenate(
        [jnp.zeros((1,), padded.dtype), jnp.cumsum(padded)[:-1]])
    pad_ends = jnp.cumsum(padded)
    dest = pad_start[g] + (jnp.arange(E, dtype=jnp.int32) - group_start[g])

    Ep = _round_up(E, TE) + T_n * TE        # static bound on sum(padded), TE-multiple
    W = Ep // TE                            # number of edge tiles / work items

    # per-edge feature rows (+ constant-1 bias feature) scattered into the
    # group-padded layout; padded rows stay all-zero and get head = -1.
    feat = jnp.concatenate([x[heads_s], x[tails_s], rel_s,
                            jnp.ones((E, 1), x.dtype)], axis=1)          # [E, Din+1]
    edge_feat = jnp.zeros((Ep, Din + 1), x.dtype).at[dest].set(feat)
    edge_h_p = jnp.zeros((Ep, Din_p), jnp.bfloat16).at[:, :Din + 1].set(
        edge_feat.astype(jnp.bfloat16))
    head_p = jnp.full((Ep,), -1, jnp.int32).at[dest].set(heads_s).reshape(1, Ep)

    # edge-tile -> node-tile table (non-decreasing); unused tail tiles are
    # attached to the last node tile and contribute nothing (head = -1).
    tile_starts = jnp.arange(W, dtype=jnp.int32) * TE
    tile_node = jnp.minimum(
        jnp.searchsorted(pad_ends, tile_starts, side="right"),
        T_n - 1).astype(jnp.int32)

    # augmented weights: cols [0, out_f) = w1^T; col out_f = constant-1 bias
    # (produces the rowsum column); col out_f+1 = (w2 @ w1)^T (attention score).
    w1t_aug = jnp.zeros((Din + 1, out_f + 2), jnp.float32)
    w1t_aug = w1t_aug.at[:Din, :out_f].set(w1.T)
    w1t_aug = w1t_aug.at[Din, out_f].set(1.0)
    w1t_aug = w1t_aug.at[:Din, out_f + 1].set((w2 @ w1)[0])
    w1t_p = jnp.zeros((Din_p, Dout_p), jnp.bfloat16).at[
        :Din + 1, :out_f + 2].set(w1t_aug.astype(jnp.bfloat16))

    # ---------------- pass 1: edge transform (grid over edge tiles) --------
    cost1 = pl.CostEstimate(
        flops=int(2 * Ep * Din_p * Dout_p),
        transcendentals=int(Ep),
        bytes_accessed=int(Ep * Din_p * 2 + Din_p * Dout_p * 2 + Ep * Dout_p * 2))
    edge_w = pl.pallas_call(
        functools.partial(edge_transform_kernel, alpha=float(alpha),
                          score_col=int(out_f + 1)),
        out_shape=jax.ShapeDtypeStruct((Ep, Dout_p), jnp.bfloat16),
        grid=(W,),
        in_specs=[pl.BlockSpec((TE, Din_p), lambda e: (e, 0)),
                  pl.BlockSpec((Din_p, Dout_p), lambda e: (0, 0))],
        out_specs=pl.BlockSpec((TE, Dout_p), lambda e: (e, 0)),
        compiler_params=pltpu.CompilerParams(
            dimension_semantics=("parallel",)),
        cost_estimate=cost1,
    )(edge_h_p, w1t_p)

    # ---------------- pass 2: segmented one-hot scatter --------------------
    cost2 = pl.CostEstimate(
        flops=int(2 * Ep * TN * Dout_p),
        transcendentals=int(Np * Dout_p),
        bytes_accessed=int(Ep * Dout_p * 2 + Ep * 4 + Np * Dout_p * 4))
    out = pl.pallas_call(
        functools.partial(scatter_kernel, tn=int(TN), out_f=int(out_f),
                          concat=bool(concat)),
        out_shape=jax.ShapeDtypeStruct((Np, Dout_p), x.dtype),
        grid_spec=pltpu.PrefetchScalarGridSpec(
            num_scalar_prefetch=1,
            grid=(W,),
            in_specs=[pl.BlockSpec((1, TE), lambda w, tn_ref: (0, w)),
                      pl.BlockSpec((TE, Dout_p), lambda w, tn_ref: (w, 0))],
            out_specs=pl.BlockSpec((TN, Dout_p),
                                   lambda w, tn_ref: (tn_ref[w], 0)),
            scratch_shapes=[pltpu.VMEM((TN, Dout_p), jnp.float32)]),
        compiler_params=pltpu.CompilerParams(
            dimension_semantics=("arbitrary",)),
        cost_estimate=cost2,
    )(tile_node, head_p, edge_w)
    return out[:N, :out_f]


def _reference_forward(x, entity_list, edge_embed, entity_list_nhop,
                       edge_embed_nhop, w1, w2, alpha, concat=True,
                       emulate_bf16=False):
    """Pure-JAX reference of the PyTorch forward (eval-mode dropout).

    With emulate_bf16=True, the bf16 casts of the kernel's MXU operands /
    intermediate edge messages are reproduced so the kernel can be checked at
    tight tolerance.
    """
    N = x.shape[0]
    out_f = w1.shape[0]
    e_all = jnp.concatenate([entity_list, entity_list_nhop], axis=1)
    r_all = jnp.concatenate([edge_embed, edge_embed_nhop], axis=0)
    edge_h = jnp.concatenate([x[e_all[0]], x[e_all[1]], r_all], axis=1)    # [E, Din]
    if emulate_bf16:
        eh = edge_h.astype(jnp.bfloat16)
        w1t = w1.T.astype(jnp.bfloat16)
        w2w1 = (w2 @ w1).T.astype(jnp.bfloat16)
        edge_m = jnp.dot(eh, w1t, preferred_element_type=jnp.float32)
        s = jnp.dot(eh, w2w1, preferred_element_type=jnp.float32)[:, 0]
    else:
        edge_m = edge_h @ w1.T
        s = (edge_m @ w2.T)[:, 0]
    powers = -jnp.where(s > 0, s, alpha * s)
    edge_e = jnp.exp(powers)
    ew_scalar = edge_e[:, None]
    edge_w = ew_scalar * edge_m
    if emulate_bf16:
        edge_w = edge_w.astype(jnp.bfloat16).astype(jnp.float32)
        ew_scalar = ew_scalar.astype(jnp.bfloat16).astype(jnp.float32)
    rowsum = jnp.zeros((N, 1), jnp.float32).at[e_all[0]].add(ew_scalar)
    rowsum = jnp.where(rowsum == 0.0, 1e-12, rowsum)
    h_prime = jnp.zeros((N, out_f), jnp.float32).at[e_all[0]].add(edge_w)
    h_prime = h_prime / rowsum
    return jnp.where(h_prime > 0, h_prime, jnp.exp(h_prime) - 1.0) if concat else h_prime


if __name__ == "__main__":
    key = jax.random.PRNGKey(0)
    N, in_f, out_f, nrela = 300, 16, 16, 8
    E1, E2 = 500, 220
    alpha = 0.2

    ks = jax.random.split(key, 7)
    x = jax.random.normal(ks[0], (N, in_f), jnp.float32)
    entity_list = jax.random.randint(ks[1], (2, E1), 0, N)
    edge_embed = jax.random.normal(ks[2], (E1, nrela), jnp.float32)
    entity_list_nhop = jax.random.randint(ks[3], (2, E2), 0, N)
    edge_embed_nhop = jax.random.normal(ks[4], (E2, nrela), jnp.float32)

    # deterministic xavier_normal_(gain=1.414)-style init
    Din = 2 * in_f + nrela
    std1 = 1.414 * (2.0 / (out_f + Din)) ** 0.5
    w1 = std1 * jax.random.normal(ks[5], (out_f, Din), jnp.float32)
    std2 = 1.414 * (2.0 / (1 + out_f)) ** 0.5
    w2 = std2 * jax.random.normal(ks[6], (1, out_f), jnp.float32)

    ref_bf16 = np.asarray(_reference_forward(
        x, entity_list, edge_embed, entity_list_nhop, edge_embed_nhop,
        w1, w2, alpha, concat=True, emulate_bf16=True))
    ref_fp32 = np.asarray(_reference_forward(
        x, entity_list, edge_embed, entity_list_nhop, edge_embed_nhop,
        w1, w2, alpha, concat=True, emulate_bf16=False))

    # Config A: default-style large tiles (single node tile, few edge tiles).
    # Config B: small tiles -> exercises the multi-group segmented scatter path.
    for tn, te in ((512, 512), (64, 128)):
        out = sp_graph_attention_forward(x, entity_list, edge_embed,
                                         entity_list_nhop, edge_embed_nhop,
                                         w1, w2, alpha, concat=True,
                                         tile_n=tn, tile_e=te)
        out_np = np.asarray(jax.block_until_ready(out))
        # Tight check vs a reference reproducing the kernel's bf16 rounding.
        np.testing.assert_allclose(out_np, ref_bf16, rtol=1e-2, atol=1e-2)
        # Loose semantic check vs the exact fp32 module reference.
        np.testing.assert_allclose(out_np, ref_fp32, rtol=1e-1, atol=1.5e-1)

    print("KERNEL_OK")
</pallas_src>

<mosaic_0001>
module attributes {stable_mosaic.version = 11 : i64} {
  func.func @edge_transform_kernel(%arg0: i32, %arg1: memref<512x128xbf16, #tpu.memory_space<vmem>>, %arg2: memref<128x128xbf16, #tpu.memory_space<vmem>>, %arg3: memref<512x128xbf16, #tpu.memory_space<vmem>>) attributes {dimension_semantics = [#tpu.dimension_semantics<parallel>], iteration_bounds = array<i64: 3>, scalar_prefetch = 0 : i64, scratch_operands = 0 : i64, tpu.core_type = #tpu.core_type<tc>, window_params = [{transform_indices = @transform_0, window_bounds = array<i64: 512, 128>}, {pipeline_mode = #tpu.pipeline_mode<synchronous>, transform_indices = @transform_1, window_bounds = array<i64: 128, 128>}, {transform_indices = @transform_2, window_bounds = array<i64: 512, 128>}]} {
    %c0 = arith.constant 0 : index
    %c0_0 = arith.constant 0 : index
    %0 = vector.load %arg1[%c0, %c0_0] : memref<512x128xbf16, #tpu.memory_space<vmem>>, vector<512x128xbf16>
    %c0_1 = arith.constant 0 : index
    %c0_2 = arith.constant 0 : index
    %1 = vector.load %arg2[%c0_1, %c0_2] : memref<128x128xbf16, #tpu.memory_space<vmem>>, vector<128x128xbf16>
    %cst = arith.constant dense<0.000000e+00> : vector<512x128xf32>
    %2 = tpu.matmul %0, %1, %cst {dimension_numbers = #tpu.dot_dimension_numbers<[1], [0], [0], [1], [0, 0, 1, 1], [], []>} : vector<512x128xbf16>, vector<128x128xbf16>, vector<512x128xf32> -> vector<512x128xf32>
    %3 = vector.extract_strided_slice %2 {offsets = [0, 17], sizes = [512, 1], strides = [1, 1]} : vector<512x128xf32> to vector<512x1xf32>
    %cst_3 = arith.constant 0.000000e+00 : f32
    %4 = vector.broadcast %cst_3 : f32 to vector<512x1xf32>
    %5 = arith.cmpf ogt, %3, %4 : vector<512x1xf32>
    %cst_4 = arith.constant 2.000000e-01 : f32
    %6 = vector.broadcast %cst_4 : f32 to vector<512x1xf32>
    %7 = arith.mulf %6, %3 : vector<512x1xf32>
    %8 = arith.select %5, %3, %7 : vector<512x1xi1>, vector<512x1xf32>
    %cst_5 = arith.constant 0.000000e+00 : f32
    %9 = vector.broadcast %cst_5 : f32 to vector<512x1xf32>
    %10 = arith.subf %9, %8 : vector<512x1xf32>
    %cst_6 = arith.constant 8.000000e+01 : f32
    %11 = vector.broadcast %cst_6 : f32 to vector<512x1xf32>
    %12 = arith.minimumf %10, %11 : vector<512x1xf32>
    %13 = math.exp %12 : vector<512x1xf32>
    %14 = vector.broadcast %13 : vector<512x1xf32> to vector<512x128xf32>
    %15 = arith.mulf %14, %2 : vector<512x128xf32>
    %16 = arith.truncf %15 : vector<512x128xf32> to vector<512x128xbf16>
    %c0_7 = arith.constant 0 : index
    %c0_8 = arith.constant 0 : index
    %17 = vector.load %arg3[%c0_7, %c0_8] : memref<512x128xbf16, #tpu.memory_space<vmem>>, vector<512x128xbf16>
    tpu.vector_store %arg3[%c0_7, %c0_8], %16 {strides = array<i32>} : memref<512x128xbf16, #tpu.memory_space<vmem>>, vector<512x128xbf16>,
    return
  }
  func.func @transform_0(%arg0: i32) -> (i32, i32) {
    %c0_i32 = arith.constant 0 : i32
    %c0_i32_0 = arith.constant 0 : i32
    return %arg0, %c0_i32 : i32, i32
  }
  func.func @transform_1(%arg0: i32) -> (i32, i32) {
    %c0_i32 = arith.constant 0 : i32
    %c0_i32_0 = arith.constant 0 : i32
    %c0_i32_1 = arith.constant 0 : i32
    return %c0_i32, %c0_i32_0 : i32, i32
  }
  func.func @transform_2(%arg0: i32) -> (i32, i32) {
    %c0_i32 = arith.constant 0 : i32
    %c0_i32_0 = arith.constant 0 : i32
    return %arg0, %c0_i32 : i32, i32
  }
}

</mosaic_0001>

<bundles_post_ra>
// kernel: tpu_custom_call.1
= control target key start
LH: loop header
LB: loop body
LE: loop exit
PB: predicated region body
PF: predicated region fallthrough
CT: control target
= control target key end

     0   :  { %7 = vsyncpa [#allocation3], 0  ;;  %s3134_s0 = inlined_call_operand.hbm [shape: bf16[1536,128], index: 0, kind: input, shape index: {}]   ;;  %s3135_s1 = inlined_call_operand.hbm [shape: bf16[128,128], index: 1, kind: input, shape index: {}]   ;;  %s3136_s2 = inlined_call_operand.hbm [shape: bf16[1536,128], index: 2, kind: output, shape index: {}]  }
   0x1   :  { %9 = vsyncpa [#allocation3 + $0x1], 0 }
   0x2   :  { %10 = vsyncpa [#allocation6], 0 }
   0x3   :  { %11 = vsyncpa [#allocation4], 0 }
   0x4   :  { %13 = vsyncpa [#allocation4 + $0x1], 0  ;;  %s2510_s9 = smov 0   ;;  %s2512_s10 = smov 0  }
   0x5   :  { %s2514_s11 = smov 0   ;;  %s2516_s12 = smov 0  }
   0x6 LB: > { %s2531_s13 = sadd.s32 4294967295, %s2487_s12   ;;  %s1731_s14 = sadd.s32 4294967294, %s2487_s12   ;;  %s2487_s12 = sphi %s2516_s12, %s3208_s12   ;;  %s2483_s11 = sphi %s2514_s11, %s3207_s11   ;;  %s2479_s10 = sphi %s2512_s10, %s3206_s10   ;;  %s2475_s9 = sphi %s2510_s9, %s3205_s9  }
   0x7   : > { %p39_p0 = scmp.ne.s32.totalorder %s2479_s10, %s2475_s9  ;;  %p40_p1 = scmp.eq.s32.totalorder %s2531_s13, 0 }
   0x8   : > { %p84_p2 = scmp.eq.s32.totalorder %s2531_s13, 2  ;;  %p90_p3 = scmp.eq.s32.totalorder %s1731_s14, 2 }
   0x9   : > { %p2540_p4 = por %p40_p1, %p39_p0  ;;  %p1732_p5 = scmp.ge.s32.totalorder %s2487_s12, 1 }
   0xa   : > { %p2545_p6 = por %p90_p3, %p39_p0  ;;  %p97_p7 = scmp.lt.s32.totalorder %s2487_s12, 4 }
   0xb   : > { %s108_s19 = sshll.u32 %s3135_s1, 4  ;;  %s2489_s21 = smov [#allocation5]   ;;  %s109_s19 = int_to_ptr.hbm [resolvable:$true] %s108_s19 }
   0xc   : > { %p2553_p8 = pnand %p1732_p5, %p97_p7  ;;  %s110_s22 = sshll.u32 %s2489_s21, 4  ;;  %s111_s22 = int_to_ptr.vmem [resolvable:$true] %s110_s22 }
   0xd   : > { %s2562_s23 = sadd.s32 1, %s2487_s12   ;;  %s2490_s24 = smov 64  }
   0xe   : > { %p2172_p9 = pneg %p2553_p8  ;;  %s2491_s25 = smov 4  }
   0xf   : > { %s23_s26 = ssub.s32 %s2487_s12, %s2562_s23  ;;  %s26_s27 = sadd.s32 1, %s2483_s11 }
  0x10   : > { %p2173_p10 = pnand %p2172_p9, %p40_p1  ;;  %p24_p11 = scmp.eq.s32.totalorder %s23_s26, 0 }
  0x11   : > { %p33_p12 = scmp.ne.s32.totalorder %s2483_s11, %s2479_s10  ;;  %p34_p13 = scmp.eq.s32.totalorder %s2487_s12, 0 }
  0x12   : > { %2175 = dma.hbm_to_vmem [thread:$0]  (!%p2173_p10), %s109_s19, 1024, %s111_s22, [#allocation6], %s2490_s24, %s2490_s24, %s2491_s25  }
  0x13   : > { %s2574_s28 = scalar_select %p24_p11, %s2483_s11, %s26_s27  }
  0x14   : > { %p2578_p0 = por %p84_p2, %p33_p12  ;;  %p2185_p3 = scmp.lt.s32.totalorder %s2487_s12, 3 }
  0x15   : > { %s124_s30 = sand.u32 1, %s2483_s11   ;;  %s1907_s3 = sshll.u32 %s2487_s12, 8 }
  0x16   : > { %p35_p5 = por %p34_p13, %p33_p12  ;;  %s1735_s4 = sshll.u32 %s124_s30, 8 }
  0x17   : > { %s133_s7 = scalar_lea.hbm %s3134_s0, %s1907_s3  ;;  %s128_s14 = scalar_lea.vmem [#allocation2], %s1735_s4 }
  0x18   : > { %s134_s8 = sshll.u32 %s133_s7, 4  ;;  %s136_s17 = sshll.u32 %s128_s14, 4  ;;  %s135_s8 = int_to_ptr.hbm [resolvable:$true] %s134_s8  ;;  %s137_s17 = int_to_ptr.vmem [resolvable:$true] %s136_s17 }
  0x19   : > { %p2588_p7 = pnand %p2185_p3, %p35_p5  ;;  %s125_s19 = scalar_lea.sflag [#allocation3], %s124_s30 }
  0x1a   : > { %s2387_s21 = sshra.s32 %s135_s8, 4  ;;  %s2394_s3 = scalar_lea.hbm %s3134_s0, 768  ;;  %s2388_s21 = int_to_ptr.hbm [resolvable:$true] %s2387_s21 }
  0x1b   : > { %s2389_s22 = scalar_lea.hbm %s2388_s21, 256  ;;  %p2391_p9 = pneg %p2588_p7 }
  0x1c   : > { %p2390_p2 = scmp.ne.s32.totalorder %s2388_s21, %s2389_s22  ;;  %p2395_p12 = scmp.lt.s32.totalorder %s2388_s21, %s3134_s0 }
  0x1d   : > { %p2396_p13 = scmp.lt.s32.totalorder %s2394_s3, %s2389_s22 }
  0x1e   : > { %p2392_p10 = pnand %p2391_p9, %p2390_p2 }
  0x1f   : > { %p2397_p3 = por %p2396_p13, %p2395_p12 }
  0x20   : > { %p2393_p11 = pneg %p2392_p10 }
  0x22   : > { %p2398_p5 = pnand %p2397_p3, %p2393_p11 }
  0x24   : > { %2401 = shalt.err (!%p2398_p5)
}
  0x25   : > { %2179 = dma.hbm_to_vmem [thread:$0]  (!%p2588_p7), %s135_s8, 4096, %s137_s17, %s125_s19, %s2490_s24, %s2490_s24, %s2491_s25  }
  0x26   : > { %148 = sbr.rel (%p2553_p8) target bundleno = 517 (0x205), region = 28 }
  0x2b   : > { %s2608_s30 = sand.u32 1, %s2479_s10  }
  0x2c   : > { %s1739_s6 = sshll.u32 %s2608_s30, 8  ;;  %s151_s7 = scalar_lea.sflag [#allocation3], %s2608_s30 }
  0x2d   : > { %s2614_s14 = scalar_lea.vmem [#allocation2], %s1739_s6 }
  0x2e   : > { %2462 = dma.done.wait (%p2540_p4), %s151_s7, 4096  }
  0x2f   : > { %2464 = vsyncadd (%p2540_p4), %s151_s7, 4294963200 }
  0x30   : > { %2466 = dma.done.wait (%p40_p1), [#allocation6], 1024  }
  0x31   : > { %2468 = vsyncadd (%p40_p1), [#allocation6], 4294966272  ;;  %v1947_v0 = vld [vmem:[#allocation5 + $0x38] sm:$0xff]  ;;  %v1946_v1 = vld [vmem:[#allocation5 + $0x30] sm:$0xff]  ;;  %v2492_v39 = vmov 17   ;;  %s2939_s15 = scalar_lea.vmem [#allocation7], %s1739_s6 }
  0x32   : > { %503 = vmatpush.bf16.msra.mxu0 %v1947_v0  ;;  %2140 = vmatpush.bf16.msra.mxu1 %v1947_v0  ;;  %v1945_v2 = vld [vmem:[#allocation5 + $0x28] sm:$0xff]  ;;  %v1944_v3 = vld [vmem:[#allocation5 + $0x20] sm:$0xff]  ;;  %v1943_v4 = vld [vmem:[#allocation5 + $0x18] sm:$0xff]  ;;  %s1948_s20 = sshll.u32 %s2531_s13, 8  ;;  %s1645_s17 = sshll.u32 %s2939_s15, 4  ;;  %s1646_s17 = int_to_ptr.vmem [resolvable:$true] %s1645_s17 }
  0x33   : > { %2141 = vmatpush.bf16.msra.mxu2 %v1947_v0  ;;  %2142 = vmatpush.bf16.msra.mxu3 %v1947_v0  ;;  %v1942_v5 = vld [vmem:[#allocation5 + $0x10] sm:$0xff]  ;;  %v1941_v6 = vld [vmem:[#allocation5 + $0x8] sm:$0xff]  ;;  %v1940_v7 = vld [vmem:[#allocation5] sm:$0xff]  ;;  %s1644_s8 = scalar_lea.hbm %s3136_s2, %s1948_s20  ;;  %s1633_s13 = scalar_lea.sflag [#allocation4], %s2608_s30 }
  0x34   : > { %v1908_v8 = vld [vmem:[%s2614_s14] sm:$0xff]  ;;  %v1909_v12 = vld [vmem:[%s2614_s14 + $0x8] sm:$0xff]  ;;  %v1910_v16 = vld [vmem:[%s2614_s14 + $0x10] sm:$0xff]  ;;  %2227 = vset.pattern.permute.xlu1 %v2492_v39  ;;  %2226 = vset.pattern.permute.xlu0 %v2492_v39  ;;  %s1647_s18 = sshll.u32 %s1644_s8, 4  ;;  %s2437_s27 = scalar_lea.hbm %s3136_s2, 768  ;;  %s1648_s18 = int_to_ptr.hbm [resolvable:$true] %s1647_s18 }
  0x35   : > { %v1916_v9 = vld [vmem:[%s2614_s14 + $0x40] sm:$0xff]  ;;  %v1917_v13 = vld [vmem:[%s2614_s14 + $0x48] sm:$0xff]  ;;  %v1918_v17 = vld [vmem:[%s2614_s14 + $0x50] sm:$0xff]  ;;  %2228 = vset.pattern.permute.xlu2 %v2492_v39  ;;  %s2431_s19 = sshra.s32 %s1648_s18, 4  ;;  %s2432_s19 = int_to_ptr.hbm [resolvable:$true] %s2431_s19 }
  0x36   : > { %504 = vmatpush.bf16.msra.mxu0 %v1946_v1  ;;  %2143 = vmatpush.bf16.msra.mxu1 %v1946_v1  ;;  %v1924_v10 = vld [vmem:[%s2614_s14 + $0x80] sm:$0xff]  ;;  %v1925_v14 = vld [vmem:[%s2614_s14 + $0x88] sm:$0xff]  ;;  %v1926_v18 = vld [vmem:[%s2614_s14 + $0x90] sm:$0xff]  ;;  %s2433_s21 = scalar_lea.hbm %s2432_s19, 256  ;;  %p2438_p7 = scmp.lt.s32.totalorder %s2432_s19, %s3136_s2 }
  0x37   : > { %2144 = vmatpush.bf16.msra.mxu2 %v1946_v1  ;;  %2145 = vmatpush.bf16.msra.mxu3 %v1946_v1  ;;  %v1932_v11 = vld [vmem:[%s2614_s14 + $0xc0] sm:$0xff]  ;;  %v1933_v15 = vld [vmem:[%s2614_s14 + $0xc8] sm:$0xff]  ;;  %v1934_v19 = vld [vmem:[%s2614_s14 + $0xd0] sm:$0xff]  ;;  %p2434_p1 = scmp.ne.s32.totalorder %s2432_s19, %s2433_s21  ;;  %p2439_p2 = scmp.lt.s32.totalorder %s2437_s27, %s2433_s21 }
  0x38   : > { %v1911_v20 = vld [vmem:[%s2614_s14 + $0x18] sm:$0xff]  ;;  %v1912_v24 = vld [vmem:[%s2614_s14 + $0x20] sm:$0xff]  ;;  %v1913_v28 = vld [vmem:[%s2614_s14 + $0x28] sm:$0xff] }
  0x39   : > { %v1919_v21 = vld [vmem:[%s2614_s14 + $0x58] sm:$0xff]  ;;  %v1920_v25 = vld [vmem:[%s2614_s14 + $0x60] sm:$0xff]  ;;  %v1921_v29 = vld [vmem:[%s2614_s14 + $0x68] sm:$0xff]  ;;  %p2435_p4 = pnand %p2434_p1, %p2578_p0  ;;  %p2440_p9 = por %p2439_p2, %p2438_p7 }
  0x3a   : > { %505 = vmatpush.bf16.msra.mxu0 %v1945_v2  ;;  %2146 = vmatpush.bf16.msra.mxu1 %v1945_v2  ;;  %v1927_v22 = vld [vmem:[%s2614_s14 + $0x98] sm:$0xff]  ;;  %v1928_v26 = vld [vmem:[%s2614_s14 + $0xa0] sm:$0xff]  ;;  %v1929_v30 = vld [vmem:[%s2614_s14 + $0xa8] sm:$0xff] }
  0x3b   : > { %2147 = vmatpush.bf16.msra.mxu2 %v1945_v2  ;;  %2148 = vmatpush.bf16.msra.mxu3 %v1945_v2  ;;  %v1935_v23 = vld [vmem:[%s2614_s14 + $0xd8] sm:$0xff]  ;;  %v1936_v27 = vld [vmem:[%s2614_s14 + $0xe0] sm:$0xff]  ;;  %v1937_v31 = vld [vmem:[%s2614_s14 + $0xe8] sm:$0xff]  ;;  %p2436_p8 = pneg %p2435_p4 }
  0x3c   : > { %v1914_v32 = vld [vmem:[%s2614_s14 + $0x30] sm:$0xff]  ;;  %v1931_v36 = vld [vmem:[%s2614_s14 + $0xb8] sm:$0xff] }
  0x3d   : > { %v1930_v33 = vld [vmem:[%s2614_s14 + $0xb0] sm:$0xff]  ;;  %v1923_v37 = vld [vmem:[%s2614_s14 + $0x78] sm:$0xff]  ;;  %p2441_p10 = pnand %p2440_p9, %p2436_p8 }
  0x3e   : > { %506 = vmatpush.bf16.msra.mxu0 %v1944_v3  ;;  %2149 = vmatpush.bf16.msra.mxu1 %v1944_v3  ;;  %v1938_v34 = vld [vmem:[%s2614_s14 + $0xf0] sm:$0xff]  ;;  %v1915_v38 = vld [vmem:[%s2614_s14 + $0x38] sm:$0xff] }
  0x3f   : > { %2150 = vmatpush.bf16.msra.mxu2 %v1944_v3  ;;  %2151 = vmatpush.bf16.msra.mxu3 %v1944_v3  ;;  %v1922_v35 = vld [vmem:[%s2614_s14 + $0x70] sm:$0xff]  ;;  %v1939_v40 = vld [vmem:[%s2614_s14 + $0xf8] sm:$0xff] }
  0x42   : > { %507 = vmatpush.bf16.msra.mxu0 %v1943_v4  ;;  %2152 = vmatpush.bf16.msra.mxu1 %v1943_v4 }
  0x43   : > { %2153 = vmatpush.bf16.msra.mxu2 %v1943_v4  ;;  %2154 = vmatpush.bf16.msra.mxu3 %v1943_v4 }
  0x46   : > { %508 = vmatpush.bf16.msra.mxu0 %v1942_v5  ;;  %2155 = vmatpush.bf16.msra.mxu1 %v1942_v5 }
  0x47   : > { %2156 = vmatpush.bf16.msra.mxu2 %v1942_v5  ;;  %2157 = vmatpush.bf16.msra.mxu3 %v1942_v5 }
  0x4a   : > { %509 = vmatpush.bf16.msra.mxu0 %v1941_v6  ;;  %2158 = vmatpush.bf16.msra.mxu1 %v1941_v6 }
  0x4b   : > { %2159 = vmatpush.bf16.msra.mxu2 %v1941_v6  ;;  %2160 = vmatpush.bf16.msra.mxu3 %v1941_v6 }
  0x4e   : > { %510 = vmatpush.bf16.msra.mxu0 %v1940_v7  ;;  %2161 = vmatpush.bf16.msra.mxu1 %v1940_v7 }
  0x4f   : > { %2162 = vmatpush.bf16.msra.mxu2 %v1940_v7  ;;  %2163 = vmatpush.bf16.msra.mxu3 %v1940_v7 }
  0x51   : > { %511 = vmatmul.bf16.vlgmr.msra.gmra.mxu0 %v1908_v8  ;;  %551 = vmatmul.bf16.vlgmr.msra.gmra.mxu1 %v1916_v9 }
  0x52   : > { %591 = vmatmul.bf16.vlgmr.msra.gmra.mxu2 %v1924_v10  ;;  %631 = vmatmul.bf16.vlgmr.msra.gmra.mxu3 %v1932_v11 }
  0x61   : > { %516 = vmatmul.bf16.gmra.mxu0 %v1909_v12  ;;  %556 = vmatmul.bf16.gmra.mxu1 %v1917_v13 }
  0x62   : > { %596 = vmatmul.bf16.gmra.mxu2 %v1925_v14  ;;  %636 = vmatmul.bf16.gmra.mxu3 %v1933_v15 }
  0x71   : > { %521 = vmatmul.bf16.gmra.mxu0 %v1910_v16  ;;  %561 = vmatmul.bf16.gmra.mxu1 %v1918_v17 }
  0x72   : > { %601 = vmatmul.bf16.gmra.mxu2 %v1926_v18  ;;  %641 = vmatmul.bf16.gmra.mxu3 %v1934_v19 }
  0x81   : > { %526 = vmatmul.bf16.gmra.mxu0 %v1911_v20  ;;  %566 = vmatmul.bf16.gmra.mxu1 %v1919_v21 }
  0x82   : > { %606 = vmatmul.bf16.gmra.mxu2 %v1927_v22  ;;  %646 = vmatmul.bf16.gmra.mxu3 %v1935_v23 }
  0x91   : > { %531 = vmatmul.bf16.gmra.mxu0 %v1912_v24  ;;  %571 = vmatmul.bf16.gmra.mxu1 %v1920_v25 }
  0x92   : > { %611 = vmatmul.bf16.gmra.mxu2 %v1928_v26  ;;  %651 = vmatmul.bf16.gmra.mxu3 %v1936_v27 }
  0xa1   : > { %536 = vmatmul.bf16.gmra.mxu0 %v1913_v28  ;;  %576 = vmatmul.bf16.gmra.mxu1 %v1921_v29 }
  0xa2   : > { %616 = vmatmul.bf16.gmra.mxu2 %v1929_v30  ;;  %656 = vmatmul.bf16.gmra.mxu3 %v1937_v31 }
  0xb1   : > { %541 = vmatmul.bf16.gmra.mxu0 %v1914_v32  ;;  %581 = vmatmul.bf16.gmra.mxu1 %v1922_v35 }
  0xb2   : > { %621 = vmatmul.bf16.gmra.mxu2 %v1930_v33  ;;  %661 = vmatmul.bf16.gmra.mxu3 %v1938_v34 }
  0xc1   : > { %586 = vmatmul.bf16.gmra.mxu1 %v1923_v37  ;;  %546 = vmatmul.bf16.gmra.mxu0 %v1915_v38 }
  0xc2   : > { %626 = vmatmul.bf16.gmra.mxu2 %v1931_v36  ;;  %666 = vmatmul.bf16.gmra.mxu3 %v1939_v40 }
  0xce   : > { %v2656_v41 = vpop.f32.mrf.mxu0  ;;  %v2658_v42 = vpop.f32.mrf.mxu1 }
  0xcf   : > { %vm672_vm0 = vcmp.gt.f32.partialorder %v2656_v41, 0.0  ;;  %v736_v43 = vmul.f32 0.2, %v2656_v41  ;;  %vm688_vm1 = vcmp.gt.f32.partialorder %v2658_v42, 0.0  ;;  %v752_v44 = vmul.f32 0.2, %v2658_v42 }
  0xd1   : > { %v800_v45 = vsel %vm672_vm0, %v2656_v41, %v736_v43  ;;  %v816_v46 = vsel %vm688_vm1, %v2658_v42, %v752_v44 }
  0xd2   : > { %v864_v47 = vsub.f32 0.0, %v800_v45  ;;  %v880_v48 = vsub.f32 0.0, %v816_v46 }
  0xd4   : > { %v928_v49 = vmin.f32 %v864_v47, 80.0  ;;  %v944_v50 = vmin.f32 %v880_v48, 80.0 }
  0xd5   : > { %v2666_v51 = vpop.f32.mrf.mxu2  ;;  %v2668_v52 = vpop.f32.mrf.mxu3 }
  0xd6   : > { %vm704_vm2 = vcmp.gt.f32.partialorder %v2666_v51, 0.0  ;;  %v768_v53 = vmul.f32 0.2, %v2666_v51  ;;  %vm720_vm3 = vcmp.gt.f32.partialorder %v2668_v52, 0.0  ;;  %v784_v54 = vmul.f32 0.2, %v2668_v52  ;;  %v2674_v55 = vpop.f32.mrf.mxu0  ;;  %v2676_v56 = vpop.f32.mrf.mxu1 }
  0xd7   : > { %vm673_vm4 = vcmp.gt.f32.partialorder %v2674_v55, 0.0  ;;  %v737_v57 = vmul.f32 0.2, %v2674_v55  ;;  %vm689_vm5 = vcmp.gt.f32.partialorder %v2676_v56, 0.0  ;;  %v753_v58 = vmul.f32 0.2, %v2676_v56 }
  0xd8   : > { %v832_v59 = vsel %vm704_vm2, %v2666_v51, %v768_v53  ;;  %v848_v60 = vsel %vm720_vm3, %v2668_v52, %v784_v54  ;;  %v1024_v61 = vmul.f32 1.442695, %v944_v50  ;;  %v992_v62 = vmul.f32 1.442695, %v928_v49 }
  0xd9   : > { %v896_v63 = vsub.f32 0.0, %v832_v59  ;;  %v912_v0 = vsub.f32 0.0, %v848_v60  ;;  %v801_v1 = vsel %vm673_vm4, %v2674_v55, %v737_v57  ;;  %v817_v2 = vsel %vm689_vm5, %v2676_v56, %v753_v58 }
  0xda   : > { %2229 = vpow2.f32 %v1024_v61  ;;  %v865_v5 = vsub.f32 0.0, %v801_v1  ;;  %v881_v6 = vsub.f32 0.0, %v817_v2 }
  0xdb   : > { %v960_v3 = vmin.f32 %v896_v63, 80.0  ;;  %v976_v4 = vmin.f32 %v912_v0, 80.0  ;;  %2231 = vpow2.f32 %v992_v62 }
  0xdc   : > { %v929_v15 = vmin.f32 %v865_v5, 80.0  ;;  %v945_v19 = vmin.f32 %v881_v6, 80.0 }
  0xdd   : > { %v2686_v7 = vpop.f32.mrf.mxu2  ;;  %v2688_v8 = vpop.f32.mrf.mxu3  ;;  %v1088_v9 = vmul.f32 1.442695, %v976_v4  ;;  %v1056_v13 = vmul.f32 1.442695, %v960_v3 }
  0xde   : > { %vm721_vm6 = vcmp.gt.f32.partialorder %v2688_v8, 0.0  ;;  %v2691_v10 = vpop.f32.mrf.mxu0  ;;  %v2693_v11 = vpop.f32.mrf.mxu1  ;;  %v785_v12 = vmul.f32 0.2, %v2688_v8  ;;  %v769_v16 = vmul.f32 0.2, %v2686_v7  ;;  %vm705_vm8 = vcmp.gt.f32.partialorder %v2686_v7, 0.0 }
  0xdf   : > { %vm674_vm7 = vcmp.gt.f32.partialorder %v2691_v10, 0.0  ;;  %v738_v17 = vmul.f32 0.2, %v2691_v10  ;;  %2233 = vpow2.f32 %v1088_v9  ;;  %v994_v24 = vmul.f32 1.442695, %v929_v15 }
  0xe0   : > { %v2230_v14 = vpop.eup %2229  ;;  %v849_v20 = vsel %vm721_vm6, %v2688_v8, %v785_v12  ;;  %2235 = vpow2.f32 %v1056_v13  ;;  %v833_v25 = vsel %vm705_vm8, %v2686_v7, %v769_v16  ;;  %v1026_v27 = vmul.f32 1.442695, %v945_v19 }
  0xe1   : > { %v2232_v18 = vpop.eup %2231  ;;  %1202 = vperm.xlu1 %2227, %v2230_v14   ;;  %v913_v21 = vsub.f32 0.0, %v849_v20  ;;  %v802_v22 = vsel %vm674_vm7, %v2691_v10, %v738_v17  ;;  %vm690_vm9 = vcmp.gt.f32.partialorder %v2693_v11, 0.0  ;;  %v754_v31 = vmul.f32 0.2, %v2693_v11 }
  0xe2   : > { %1122 = vperm.xlu0 %2226, %v2232_v18   ;;  %v866_v23 = vsub.f32 0.0, %v802_v22  ;;  %v897_v33 = vsub.f32 0.0, %v833_v25  ;;  %2237 = vpow2.f32 %v994_v24 }
  0xe3   : > { %v977_v26 = vmin.f32 %v913_v21, 80.0  ;;  %v818_v43 = vsel %vm690_vm9, %v2693_v11, %v754_v31 }
  0xe4   : > { %v930_v34 = vmin.f32 %v866_v23, 80.0  ;;  %v961_v45 = vmin.f32 %v897_v33, 80.0  ;;  %v882_v58 = vsub.f32 0.0, %v818_v43 }
  0xe5   : > { %v2703_v28 = vpop.f32.mrf.mxu2  ;;  %v2705_v29 = vpop.f32.mrf.mxu3  ;;  %v1090_v30 = vmul.f32 1.442695, %v977_v26 }
  0xe6   : > { %vm706_vm10 = vcmp.gt.f32.partialorder %v2703_v28, 0.0  ;;  %v2710_v32 = vpop.f32.mrf.mxu0  ;;  %v770_v35 = vmul.f32 0.2, %v2703_v28  ;;  %vm722_vm11 = vcmp.gt.f32.partialorder %v2705_v29, 0.0  ;;  %v2234_v36 = vpop.eup %2233  ;;  %v786_v37 = vmul.f32 0.2, %v2705_v29 }
  0xe7   : > { %v2715_v38 = vpop.f32.mrf.mxu1  ;;  %v2236_v39 = vpop.eup %2235  ;;  %2239 = vpow2.f32 %v1090_v30  ;;  %v996_v46 = vmul.f32 1.442695, %v930_v34  ;;  %v739_v49 = vmul.f32 0.2, %v2710_v32  ;;  %vm675_vm12 = vcmp.gt.f32.partialorder %v2710_v32, 0.0 }
  0xe8   : > { %v834_v40 = vsel %vm706_vm10, %v2703_v28, %v770_v35  ;;  %2241 = vpow2.f32 %v1026_v27  ;;  %v850_v44 = vsel %vm722_vm11, %v2705_v29, %v786_v37  ;;  %1282 = vperm.xlu2 %2228, %v2236_v39   ;;  %v2238_v57 = vpop.eup %2237  ;;  %v1058_v62 = vmul.f32 1.442695, %v961_v45 }
  0xe9   : > { %v898_v47 = vsub.f32 0.0, %v834_v40  ;;  %v914_v48 = vsub.f32 0.0, %v850_v44  ;;  %2243 = vpow2.f32 %v996_v46  ;;  %v803_v2 = vsel %vm675_vm12, %v2710_v32, %v739_v49 }
  0xea   : > { %1362 = vperm.xlu0 %2226, %v2234_v36   ;;  %v946_v9 = vmin.f32 %v882_v58, 80.0  ;;  %v867_v16 = vsub.f32 0.0, %v803_v2  ;;  %v755_v19 = vmul.f32 0.2, %v2715_v38  ;;  %vm691_vm0 = vcmp.gt.f32.partialorder %v2715_v38, 0.0 }
  0xeb   : > { %v978_v50 = vmin.f32 %v914_v48, 80.0  ;;  %v962_v63 = vmin.f32 %v898_v47, 80.0 }
  0xec   : > { %v1028_v24 = vmul.f32 1.442695, %v946_v9  ;;  %v931_v27 = vmin.f32 %v867_v16, 80.0  ;;  %v819_v33 = vsel %vm691_vm0, %v2715_v38, %v755_v19 }
  0xed   : > { %v2724_v53 = vpop.f32.mrf.mxu2  ;;  %v2726_v54 = vpop.f32.mrf.mxu3  ;;  %v1092_v0 = vmul.f32 1.442695, %v978_v50  ;;  %v1060_v13 = vmul.f32 1.442695, %v962_v63  ;;  %v883_v43 = vsub.f32 0.0, %v819_v33 }
  0xee   : > { %vm707_vm13 = vcmp.gt.f32.partialorder %v2724_v53, 0.0  ;;  %v771_v59 = vmul.f32 0.2, %v2724_v53  ;;  %v2730_v60 = vpop.f32.mrf.mxu0  ;;  %v2240_v61 = vpop.eup %2239  ;;  %v787_v4 = vmul.f32 0.2, %v2726_v54  ;;  %vm723_vm15 = vcmp.gt.f32.partialorder %v2726_v54, 0.0 }
  0xef   : > { %v2242_v1 = vpop.eup %2241  ;;  %1367 = vperm.xlu1 %2227, %v2240_v61   ;;  %vm676_vm14 = vcmp.gt.f32.partialorder %v2730_v60, 0.0  ;;  %2245 = vpow2.f32 %v1092_v0  ;;  %v740_v6 = vmul.f32 0.2, %v2730_v60  ;;  %v2738_v12 = vpop.f32.mrf.mxu1  ;;  %v998_v40 = vmul.f32 1.442695, %v931_v27 }
  0xf0   : > { %v835_v3 = vsel %vm707_vm13, %v2724_v53, %v771_v59  ;;  %1207 = vperm.xlu2 %2228, %v2242_v1   ;;  %2247 = vpow2.f32 %v1058_v62  ;;  %v851_v17 = vsel %vm723_vm15, %v2726_v54, %v787_v4  ;;  %v2244_v18 = vpop.eup %2243  ;;  %v756_v22 = vmul.f32 0.2, %v2738_v12 }
  0xf1   : > { %v899_v5 = vsub.f32 0.0, %v835_v3  ;;  %v804_v15 = vsel %vm676_vm14, %v2730_v60, %v740_v6  ;;  %2249 = vpow2.f32 %v1060_v13  ;;  %v915_v25 = vsub.f32 0.0, %v851_v17 }
  0xf2   : > { %1127 = vperm.xlu0 %2226, %v2238_v57   ;;  %v868_v21 = vsub.f32 0.0, %v804_v15  ;;  %vm692_vm1 = vcmp.gt.f32.partialorder %v2738_v12, 0.0  ;;  %v947_v62 = vmin.f32 %v883_v43, 80.0 }
  0xf3   : > { %v963_v14 = vmin.f32 %v899_v5, 80.0  ;;  %v820_v35 = vsel %vm692_vm1, %v2738_v12, %v756_v22  ;;  %v979_v36 = vmin.f32 %v915_v25, 80.0 }
  0xf4   : > { %v932_v34 = vmin.f32 %v868_v21, 80.0  ;;  %v884_v49 = vsub.f32 0.0, %v820_v35  ;;  %v1030_v9 = vmul.f32 1.442695, %v947_v62 }
  0xf5   : > { %v1062_v20 = vmul.f32 1.442695, %v963_v14  ;;  %v2246_v23 = vpop.eup %2245  ;;  %v2746_v26 = vpop.f32.mrf.mxu2  ;;  %v1094_v58 = vmul.f32 1.442695, %v979_v36 }
  0xf6   : > { %v772_v30 = vmul.f32 0.2, %v2746_v26  ;;  %v2248_v31 = vpop.eup %2247  ;;  %vm708_vm2 = vcmp.gt.f32.partialorder %v2746_v26, 0.0  ;;  %v2752_v37 = vpop.f32.mrf.mxu0  ;;  %v1000_v48 = vmul.f32 1.442695, %v932_v34  ;;  %v948_v1 = vmin.f32 %v884_v49, 80.0 }
  0xf7   : > { %1132 = vperm.xlu1 %2227, %v2244_v18   ;;  %2251 = vpow2.f32 %v1062_v20  ;;  %v2754_v39 = vpop.f32.mrf.mxu3  ;;  %v2757_v45 = vpop.f32.mrf.mxu1  ;;  %v741_v50 = vmul.f32 0.2, %v2752_v37  ;;  %vm677_vm4 = vcmp.gt.f32.partialorder %v2752_v37, 0.0 }
  0xf8   : > { %1372 = vperm.xlu2 %2228, %v2246_v23   ;;  %2253 = vpow2.f32 %v1028_v24  ;;  %v836_v44 = vsel %vm708_vm2, %v2746_v26, %v772_v30  ;;  %v788_v46 = vmul.f32 0.2, %v2754_v39  ;;  %v2250_v47 = vpop.eup %2249  ;;  %vm724_vm3 = vcmp.gt.f32.partialorder %v2754_v39, 0.0 }
  0xf9   : > { %v900_v59 = vsub.f32 0.0, %v836_v44  ;;  %v757_v61 = vmul.f32 0.2, %v2757_v45  ;;  %2255 = vpow2.f32 %v998_v40  ;;  %vm693_vm5 = vcmp.gt.f32.partialorder %v2757_v45, 0.0 }
  0xfa   : > { %1287 = vperm.xlu0 %2226, %v2248_v31   ;;  %v852_v63 = vsel %vm724_vm3, %v2754_v39, %v788_v46  ;;  %2257 = vpow2.f32 %v1000_v48  ;;  %v805_v2 = vsel %vm677_vm4, %v2752_v37, %v741_v50  ;;  %v1032_v13 = vmul.f32 1.442695, %v948_v1 }
  0xfb   : > { %2259 = vpow2.f32 %v1094_v58  ;;  %v964_v3 = vmin.f32 %v900_v59, 80.0  ;;  %v821_v4 = vsel %vm693_vm5, %v2757_v45, %v757_v61  ;;  %v916_v6 = vsub.f32 0.0, %v852_v63 }
  0xfc   : > { %v869_v14 = vsub.f32 0.0, %v805_v2  ;;  %v885_v17 = vsub.f32 0.0, %v821_v4  ;;  %2261 = vpow2.f32 %v1030_v9 }
  0xfd   : > { %v2252_v57 = vpop.eup %2251  ;;  %v2768_v5 = vpop.f32.mrf.mxu2  ;;  %v1064_v21 = vmul.f32 1.442695, %v964_v3  ;;  %v980_v22 = vmin.f32 %v916_v6, 80.0  ;;  %2263 = vpow2.f32 %v1032_v13 }
  0xfe   : > { %v2254_v0 = vpop.eup %2253  ;;  %v773_v18 = vmul.f32 0.2, %v2768_v5  ;;  %v2773_v19 = vpop.f32.mrf.mxu0  ;;  %vm709_vm6 = vcmp.gt.f32.partialorder %v2768_v5, 0.0  ;;  %v933_v27 = vmin.f32 %v869_v14, 80.0  ;;  %v949_v30 = vmin.f32 %v885_v17, 80.0 }
  0xff   : > { %1292 = vperm.xlu1 %2227, %v2250_v47   ;;  %v2770_v15 = vpop.f32.mrf.mxu3  ;;  %v2256_v16 = vpop.eup %2255  ;;  %v742_v23 = vmul.f32 0.2, %v2773_v19  ;;  %vm678_vm7 = vcmp.gt.f32.partialorder %v2773_v19, 0.0  ;;  %2265 = vpow2.f32 %v1064_v21  ;;  %v1096_v34 = vmul.f32 1.442695, %v980_v22 }
 0x100   : > { %1297 = vperm.xlu2 %2228, %v2252_v57   ;;  %v2258_v20 = vpop.eup %2257  ;;  %v789_v24 = vmul.f32 0.2, %v2770_v15  ;;  %vm725_vm8 = vcmp.gt.f32.partialorder %v2770_v15, 0.0  ;;  %v837_v31 = vsel %vm709_vm6, %v2768_v5, %v773_v18  ;;  %v2781_v33 = vpop.f32.mrf.mxu1  ;;  %v1002_v44 = vmul.f32 1.442695, %v933_v27 }
 0x101   : > { %v2260_v25 = vpop.eup %2259  ;;  %v806_v35 = vsel %vm678_vm7, %v2773_v19, %v742_v23  ;;  %v758_v36 = vmul.f32 0.2, %v2781_v33  ;;  %vm694_vm9 = vcmp.gt.f32.partialorder %v2781_v33, 0.0  ;;  %v901_v46 = vsub.f32 0.0, %v837_v31 }
 0x102   : > { %1212 = vperm.xlu0 %2226, %v2254_v0   ;;  %v853_v43 = vsel %vm725_vm8, %v2770_v15, %v789_v24  ;;  %v2262_v47 = vpop.eup %2261  ;;  %v1034_v48 = vmul.f32 1.442695, %v949_v30  ;;  %v870_v49 = vsub.f32 0.0, %v806_v35  ;;  %2267 = vpow2.f32 %v1096_v34 }
 0x103   : > { %v2264_v57 = vpop.eup %2263  ;;  %v917_v58 = vsub.f32 0.0, %v853_v43  ;;  %v822_v59 = vsel %vm694_vm9, %v2781_v33, %v758_v36  ;;  %v965_v0 = vmin.f32 %v901_v46, 80.0  ;;  %2269 = vpow2.f32 %v1002_v44 }
 0x104   : > { %v934_v1 = vmin.f32 %v870_v49, 80.0  ;;  %v886_v2 = vsub.f32 0.0, %v822_v59  ;;  %2271 = vpow2.f32 %v1034_v48 }
 0x105   : > { %v2785_v40 = vpop.f32.mrf.mxu2  ;;  %v2266_v63 = vpop.eup %2265  ;;  %v981_v4 = vmin.f32 %v917_v58, 80.0 }
 0x106   : > { %v774_v50 = vmul.f32 0.2, %v2785_v40  ;;  %vm710_vm10 = vcmp.gt.f32.partialorder %v2785_v40, 0.0  ;;  %v2797_v6 = vpop.f32.mrf.mxu0  ;;  %v950_v22 = vmin.f32 %v886_v2, 80.0 }
 0x107   : > { %1137 = vperm.xlu1 %2227, %v2256_v16   ;;  %v2792_v61 = vpop.f32.mrf.mxu3  ;;  %v1066_v16 = vmul.f32 1.442695, %v965_v0  ;;  %v743_v21 = vmul.f32 0.2, %v2797_v6  ;;  %v1098_v23 = vmul.f32 1.442695, %v981_v4 }
 0x108   : > { %1142 = vperm.xlu2 %2228, %v2258_v20   ;;  %v790_v62 = vmul.f32 0.2, %v2792_v61  ;;  %vm726_vm11 = vcmp.gt.f32.partialorder %v2792_v61, 0.0  ;;  %v838_v3 = vsel %vm710_vm10, %v2785_v40, %v774_v50  ;;  %v2800_v13 = vpop.f32.mrf.mxu1  ;;  %v2268_v14 = vpop.eup %2267  ;;  %v1004_v20 = vmul.f32 1.442695, %v934_v1 }
 0x109   : > { %v902_v17 = vsub.f32 0.0, %v838_v3  ;;  %vm679_vm12 = vcmp.gt.f32.partialorder %v2797_v6, 0.0  ;;  %v2270_v27 = vpop.eup %2269  ;;  %vm695_vm13 = vcmp.gt.f32.partialorder %v2800_v13, 0.0  ;;  %2273 = vpow2.f32 %v1066_v16 }
 0x10a   : > { %1377 = vperm.xlu0 %2226, %v2260_v25   ;;  %v854_v9 = vsel %vm726_vm11, %v2792_v61, %v790_v62  ;;  %v759_v25 = vmul.f32 0.2, %v2800_v13  ;;  %v2272_v31 = vpop.eup %2271  ;;  %2275 = vpow2.f32 %v1004_v20  ;;  %v807_v35 = vsel %vm679_vm12, %v2797_v6, %v743_v21 }
 0x10b   : > { %v918_v24 = vsub.f32 0.0, %v854_v9  ;;  %v966_v34 = vmin.f32 %v902_v17, 80.0  ;;  %v1036_v36 = vmul.f32 1.442695, %v950_v22  ;;  %2277 = vpow2.f32 %v1098_v23 }
 0x10c   : > { %v823_v46 = vsel %vm695_vm13, %v2800_v13, %v759_v25  ;;  %v871_v49 = vsub.f32 0.0, %v807_v35 }
 0x10d   : > { %v2802_v18 = vpop.f32.mrf.mxu2  ;;  %v982_v44 = vmin.f32 %v918_v24, 80.0  ;;  %v1068_v50 = vmul.f32 1.442695, %v966_v34  ;;  %2279 = vpow2.f32 %v1036_v36  ;;  %v887_v58 = vsub.f32 0.0, %v823_v46 }
 0x10e   : > { %v775_v30 = vmul.f32 0.2, %v2802_v18  ;;  %vm711_vm14 = vcmp.gt.f32.partialorder %v2802_v18, 0.0  ;;  %v935_v9 = vmin.f32 %v871_v49, 80.0 }
 0x10f   : > { %1217 = vperm.xlu1 %2227, %v2262_v47   ;;  %v2811_v43 = vpop.f32.mrf.mxu3  ;;  %v2814_v47 = vpop.f32.mrf.mxu0  ;;  %v1100_v0 = vmul.f32 1.442695, %v982_v44  ;;  %2281 = vpow2.f32 %v1068_v50  ;;  %v951_v17 = vmin.f32 %v887_v58, 80.0 }
 0x110   : > { %1222 = vperm.xlu2 %2228, %v2264_v57   ;;  %v839_v48 = vsel %vm711_vm14, %v2802_v18, %v775_v30  ;;  %v791_v57 = vmul.f32 0.2, %v2811_v43  ;;  %vm727_vm15 = vcmp.gt.f32.partialorder %v2811_v43, 0.0  ;;  %v744_v59 = vmul.f32 0.2, %v2814_v47  ;;  %v2820_v62 = vpop.f32.mrf.mxu1 }
 0x111   : > { %v903_v1 = vsub.f32 0.0, %v839_v48  ;;  %vm680_vm0 = vcmp.gt.f32.partialorder %v2814_v47, 0.0  ;;  %v760_v2 = vmul.f32 0.2, %v2820_v62  ;;  %vm696_vm1 = vcmp.gt.f32.partialorder %v2820_v62, 0.0 }
 0x112   : > { %1302 = vperm.xlu0 %2226, %v2266_v63   ;;  %v2274_v63 = vpop.eup %2273  ;;  %v808_v20 = vsel %vm680_vm0, %v2814_v47, %v744_v59  ;;  %2283 = vpow2.f32 %v1100_v0  ;;  %v1006_v30 = vmul.f32 1.442695, %v935_v9  ;;  %v1038_v35 = vmul.f32 1.442695, %v951_v17 }
 0x113   : > { %v2276_v3 = vpop.eup %2275  ;;  %v967_v22 = vmin.f32 %v903_v1, 80.0  ;;  %v824_v23 = vsel %vm696_vm1, %v2820_v62, %v760_v2 }
 0x114   : > { %v2278_v4 = vpop.eup %2277  ;;  %v888_v36 = vsub.f32 0.0, %v824_v23  ;;  %2285 = vpow2.f32 %v1006_v30 }
 0x115   : > { %v2826_v16 = vpop.f32.mrf.mxu2  ;;  %v2280_v24 = vpop.eup %2279  ;;  %v1070_v48 = vmul.f32 1.442695, %v967_v22  ;;  %2287 = vpow2.f32 %v1038_v35 }
 0x116   : > { %vm712_vm2 = vcmp.gt.f32.partialorder %v2826_v16, 0.0  ;;  %v2282_v46 = vpop.eup %2281 }
 0x117   : > { %1382 = vperm.xlu1 %2227, %v2268_v14   ;;  %v855_v14 = vsel %vm727_vm15, %v2811_v43, %v791_v57  ;;  %v2829_v21 = vpop.f32.mrf.mxu3  ;;  %v2833_v34 = vpop.f32.mrf.mxu0  ;;  %2289 = vpow2.f32 %v1070_v48 }
 0x118   : > { %1147 = vperm.xlu2 %2228, %v2270_v27   ;;  %3163 = vst [vmem:[#allocation11_spill] sm:$0xff] %v2829_v21  ;;  %v919_v25 = vsub.f32 0.0, %v855_v14  ;;  %v776_v27 = vmul.f32 0.2, %v2826_v16  ;;  %v792_v44 = vmul.f32 0.2, %v2829_v21  ;;  %v2284_v58 = vpop.eup %2283  ;;  %v2841_v0 = vpop.f32.mrf.mxu1 }
 0x119   : > { %vm728_vm3 = vcmp.gt.f32.partialorder %v2829_v21, 0.0  ;;  %v745_v50 = vmul.f32 0.2, %v2833_v34  ;;  %vm681_vm4 = vcmp.gt.f32.partialorder %v2833_v34, 0.0  ;;  %3164 = vst [vmem:[#allocation12_spill] sm:$0xff] %v2841_v0  ;;  %vm697_vm5 = vcmp.gt.f32.partialorder %v2841_v0, 0.0 }
 0x11a   : > { %1227 = vperm.xlu0 %2226, %v2272_v31   ;;  %v872_v31 = vsub.f32 0.0, %v808_v20  ;;  %v983_v49 = vmin.f32 %v919_v25, 80.0  ;;  %v840_v57 = vsel %vm712_vm2, %v2826_v16, %v776_v27  ;;  %v856_v1 = vsel %vm728_vm3, %v2829_v21, %v792_v44  ;;  %v2286_v25 = vpop.eup %2285 }
 0x11b   : > { %v904_v2 = vsub.f32 0.0, %v840_v57  ;;  %v809_v9 = vsel %vm681_vm4, %v2833_v34, %v745_v50  ;;  %v761_v20 = vmul.f32 0.2, %v2841_v0  ;;  %v920_v22 = vsub.f32 0.0, %v856_v1  ;;  %v2288_v35 = vpop.eup %2287 }
 0x11c   : > { %v936_v59 = vmin.f32 %v872_v31, 80.0  ;;  %v873_v27 = vsub.f32 0.0, %v809_v9 }
 0x11d   : > { %v968_v30 = vmin.f32 %v904_v2, 80.0  ;;  %v2290_v44 = vpop.eup %2289  ;;  %v984_v48 = vmin.f32 %v920_v22, 80.0 }
 0x11e   : > { %v1008_v17 = vmul.f32 1.442695, %v936_v59  ;;  %v937_v57 = vmin.f32 %v873_v27, 80.0 }
 0x11f   : > { %1307 = vperm.xlu1 %2227, %v2274_v63   ;;  %v952_v63 = vmin.f32 %v888_v36, 80.0  ;;  %v2847_v14 = vpop.f32.mrf.mxu3  ;;  %v2855_v36 = vpop.f32.mrf.mxu0  ;;  %v1104_v2 = vmul.f32 1.442695, %v984_v48 }
 0x120   : > { %1387 = vperm.xlu2 %2228, %v2278_v4   ;;  %v1102_v4 = vmul.f32 1.442695, %v983_v49  ;;  %3165 = vst [vmem:[#allocation13_spill] sm:$0xff] %v2847_v14  ;;  %v793_v31 = vmul.f32 0.2, %v2847_v14  ;;  %vm729_vm7 = vcmp.gt.f32.partialorder %v2847_v14, 0.0  ;;  %v2859_v50 = vpop.f32.mrf.mxu1 }
 0x121   : > { %v1040_v23 = vmul.f32 1.442695, %v952_v63  ;;  %3166 = vst [vmem:[#allocation14_spill] sm:$0xff] %v2855_v36  ;;  %v746_v63 = vmul.f32 0.2, %v2855_v36  ;;  %vm682_vm8 = vcmp.gt.f32.partialorder %v2855_v36, 0.0 }
 0x122   : > { %1152 = vperm.xlu0 %2226, %v2276_v3   ;;  %v2844_v3 = vpop.f32.mrf.mxu2  ;;  %2291 = vpow2.f32 %v1102_v4  ;;  %3167 = vst [vmem:[#allocation15_spill] sm:$0xff] %v2859_v50  ;;  %v857_v59 = vsel %vm729_vm7, %v2847_v14, %v793_v31  ;;  %v762_v22 = vmul.f32 0.2, %v2859_v50  ;;  %vm698_vm9 = vcmp.gt.f32.partialorder %v2859_v50, 0.0 }
 0x123   : > { %vm713_vm6 = vcmp.gt.f32.partialorder %v2844_v3, 0.0  ;;  %2293 = vpow2.f32 %v1008_v17 }
 0x124   : > { %2295 = vpow2.f32 %v1040_v23 }
 0x127   : > { %1232 = vperm.xlu1 %2227, %v2280_v24   ;;  %v777_v24 = vmul.f32 0.2, %v2844_v3 }
 0x128   : > { %1312 = vperm.xlu2 %2228, %v2282_v46   ;;  %v825_v46 = vsel %vm697_vm5, %v2841_v0, %v761_v20  ;;  %v2292_v17 = vpop.eup %2291  ;;  %v921_v20 = vsub.f32 0.0, %v857_v59 }
 0x129   : > { %v841_v49 = vsel %vm713_vm6, %v2844_v3, %v777_v24  ;;  %v889_v1 = vsub.f32 0.0, %v825_v46  ;;  %v2294_v23 = vpop.eup %2293  ;;  %v1010_v24 = vmul.f32 1.442695, %v937_v57  ;;  %v2874_v57 = vpop.f32.mrf.mxu0 }
 0x12a   : > { %1392 = vperm.xlu0 %2226, %v2284_v58   ;;  %v1072_v58 = vmul.f32 1.442695, %v968_v30  ;;  %v905_v4 = vsub.f32 0.0, %v841_v49  ;;  %v2864_v9 = vpop.f32.mrf.mxu2  ;;  %v2296_v27 = vpop.eup %2295  ;;  %v985_v46 = vmin.f32 %v921_v20, 80.0  ;;  %v826_v49 = vsel %vm698_vm9, %v2859_v50, %v762_v22  ;;  %3170 = vst [vmem:[#allocation18_spill] sm:$0xff] %v2874_v57 }
 0x12b   : > { %3168 = vst [vmem:[#allocation16_spill] sm:$0xff] %v2864_v9  ;;  %v953_v30 = vmin.f32 %v889_v1, 80.0  ;;  %v778_v31 = vmul.f32 0.2, %v2864_v9  ;;  %vm714_vm10 = vcmp.gt.f32.partialorder %v2864_v9, 0.0  ;;  %vm683_vm12 = vcmp.gt.f32.partialorder %v2874_v57, 0.0 }
 0x12c   : > { %2297 = vpow2.f32 %v1072_v58  ;;  %v1106_v20 = vmul.f32 1.442695, %v985_v46 }
 0x12d   : > { %2299 = vpow2.f32 %v1104_v2  ;;  %v1042_v58 = vmul.f32 1.442695, %v953_v30  ;;  %v842_v59 = vsel %vm714_vm10, %v2864_v9, %v778_v31 }
 0x12e   : > { %2301 = vpow2.f32 %v1010_v24 }
 0x12f   : > { %1157 = vperm.xlu1 %2227, %v2286_v25   ;;  %v810_v25 = vsel %vm682_vm8, %v2855_v36, %v746_v63  ;;  %v2877_v63 = vpop.f32.mrf.mxu1  ;;  %2303 = vpow2.f32 %v1042_v58 }
 0x130   : > { %1237 = vperm.xlu2 %2228, %v2288_v35   ;;  %v969_v35 = vmin.f32 %v905_v4, 80.0  ;;  %v874_v48 = vsub.f32 0.0, %v810_v25  ;;  %3171 = vst [vmem:[#allocation19_spill] sm:$0xff] %v2877_v63  ;;  %v763_v24 = vmul.f32 0.2, %v2877_v63  ;;  %vm699_vm13 = vcmp.gt.f32.partialorder %v2877_v63, 0.0 }
 0x131   : > { %v2894_v14 = vpop.f32.mrf.mxu0 }
 0x132   : > { %1317 = vperm.xlu0 %2226, %v2290_v44   ;;  %v2871_v44 = vpop.f32.mrf.mxu3  ;;  %v2298_v2 = vpop.eup %2297  ;;  %v1074_v4 = vmul.f32 1.442695, %v969_v35  ;;  %v938_v25 = vmin.f32 %v874_v48, 80.0  ;;  %v827_v9 = vsel %vm699_vm13, %v2877_v63, %v763_v24  ;;  %3174 = vst [vmem:[#allocation22_spill] sm:$0xff] %v2894_v14  ;;  %vm684_vm15 = vcmp.gt.f32.partialorder %v2894_v14, 0.0 }
 0x133   : > { %3169 = vst [vmem:[#allocation17_spill] sm:$0xff] %v2871_v44  ;;  %v794_v1 = vmul.f32 0.2, %v2871_v44  ;;  %vm730_vm11 = vcmp.gt.f32.partialorder %v2871_v44, 0.0  ;;  %v2300_v22 = vpop.eup %2299  ;;  %v2883_v30 = vpop.f32.mrf.mxu2 }
 0x134   : > { %3172 = vst [vmem:[#allocation20_spill] sm:$0xff] %v2883_v30  ;;  %v2302_v35 = vpop.eup %2301  ;;  %2305 = vpow2.f32 %v1074_v4  ;;  %v1012_v48 = vmul.f32 1.442695, %v938_v25  ;;  %v748_v4 = vmul.f32 0.2, %v2894_v14  ;;  %vm715_vm14 = vcmp.gt.f32.partialorder %v2883_v30, 0.0 }
 0x135   : > { %v858_v31 = vsel %vm730_vm11, %v2871_v44, %v794_v1  ;;  %2307 = vpow2.f32 %v1106_v20  ;;  %v2304_v20 = vpop.eup %2303 }
 0x136   : > { %v922_v58 = vsub.f32 0.0, %v858_v31  ;;  %2309 = vpow2.f32 %v1012_v48 }
 0x137   : > { %1397 = vperm.xlu1 %2227, %v2292_v17   ;;  %v890_v17 = vsub.f32 0.0, %v826_v49 }
 0x138   : > { %1162 = vperm.xlu2 %2228, %v2294_v23   ;;  %v906_v23 = vsub.f32 0.0, %v842_v59  ;;  %v986_v24 = vmin.f32 %v922_v58, 80.0 }
 0x139   : > { %v954_v46 = vmin.f32 %v890_v17, 80.0  ;;  %v2898_v17 = vpop.f32.mrf.mxu1 }
 0x13a   : > { %1242 = vperm.xlu0 %2226, %v2296_v27   ;;  %v747_v27 = vmul.f32 0.2, %v2874_v57  ;;  %v970_v49 = vmin.f32 %v906_v23, 80.0  ;;  %v2890_v50 = vpop.f32.mrf.mxu3  ;;  %3175 = vst [vmem:[#allocation23_spill] sm:$0xff] %v2898_v17  ;;  %v2306_v23 = vpop.eup %2305  ;;  %v1108_v48 = vmul.f32 1.442695, %v986_v24 }
 0x13b   : > { %3173 = vst [vmem:[#allocation21_spill] sm:$0xff] %v2890_v50  ;;  %v1044_v1 = vmul.f32 1.442695, %v954_v46  ;;  %v2902_v31 = vpop.f32.mrf.mxu2  ;;  %v795_v46 = vmul.f32 0.2, %v2890_v50  ;;  %vm731_vm0 = vcmp.gt.f32.partialorder %v2890_v50, 0.0 }
 0x13c   : > { %v811_v59 = vsel %vm683_vm12, %v2874_v57, %v747_v27  ;;  %v1076_v27 = vmul.f32 1.442695, %v970_v49  ;;  %3176 = vst [vmem:[#allocation24_spill] sm:$0xff] %v2902_v31  ;;  %vm700_vm1 = vcmp.gt.f32.partialorder %v2898_v17, 0.0  ;;  %vm716_vm2 = vcmp.gt.f32.partialorder %v2902_v31, 0.0 }
 0x13d   : > { %v875_v25 = vsub.f32 0.0, %v811_v59  ;;  %2311 = vpow2.f32 %v1044_v1  ;;  %v812_v59 = vsel %vm684_vm15, %v2894_v14, %v748_v4  ;;  %v859_v57 = vsel %vm731_vm0, %v2890_v50, %v795_v46  ;;  %v2918_v46 = vpop.f32.mrf.mxu0 }
 0x13e   : > { %2313 = vpow2.f32 %v1076_v27  ;;  %v876_v58 = vsub.f32 0.0, %v812_v59  ;;  %v780_v14 = vmul.f32 0.2, %v2902_v31  ;;  %3179 = vst [vmem:[#allocation27_spill] sm:$0xff] %v2918_v46  ;;  %vm685_vm4 = vcmp.gt.f32.partialorder %v2918_v46, 0.0 }
 0x13f   : > { %1322 = vperm.xlu1 %2227, %v2298_v2   ;;  %v779_v2 = vmul.f32 0.2, %v2883_v30  ;;  %2315 = vpow2.f32 %v1108_v48 }
 0x140   : > { %1402 = vperm.xlu2 %2228, %v2300_v22   ;;  %v891_v22 = vsub.f32 0.0, %v827_v9  ;;  %v939_v9 = vmin.f32 %v875_v25, 80.0 }
 0x141   : > { %v843_v63 = vsel %vm715_vm14, %v2883_v30, %v779_v2  ;;  %v2916_v27 = vpop.f32.mrf.mxu1 }
 0x142   : > { %1167 = vperm.xlu0 %2226, %v2302_v35   ;;  %v2892_v36 = vpop.permute.xlu2 %1282  ;;  %v2308_v35 = vpop.eup %2307  ;;  %v955_v44 = vmin.f32 %v891_v22, 80.0  ;;  %v907_v49 = vsub.f32 0.0, %v843_v63  ;;  %v1014_v2 = vmul.f32 1.442695, %v939_v9  ;;  %3178 = vst [vmem:[#allocation26_spill] sm:$0xff] %v2916_v27  ;;  %vm701_vm5 = vcmp.gt.f32.partialorder %v2916_v27, 0.0 }
 0x143   : > { %v2310_v1 = vpop.eup %2309  ;;  %v2912_v25 = vpop.f32.mrf.mxu3 }
 0x144   : > { %v1046_v4 = vmul.f32 1.442695, %v955_v44  ;;  %3177 = vst [vmem:[#allocation25_spill] sm:$0xff] %v2912_v25  ;;  %v2312_v22 = vpop.eup %2311  ;;  %v796_v63 = vmul.f32 0.2, %v2912_v25  ;;  %v971_v24 = vmin.f32 %v907_v49, 80.0  ;;  %v2922_v9 = vpop.f32.mrf.mxu2  ;;  %2317 = vpow2.f32 %v1014_v2 }
 0x145   : > { %vm732_vm3 = vcmp.gt.f32.partialorder %v2912_v25, 0.0  ;;  %v2314_v44 = vpop.eup %2313  ;;  %3180 = vst [vmem:[#allocation28_spill] sm:$0xff] %v2922_v9  ;;  %vm717_vm6 = vcmp.gt.f32.partialorder %v2922_v9, 0.0 }
 0x146   : > { %2319 = vpow2.f32 %v1046_v4  ;;  %v860_v49 = vsel %vm732_vm3, %v2912_v25, %v796_v63  ;;  %v1078_v50 = vmul.f32 1.442695, %v971_v24 }
 0x147   : > { %1247 = vperm.xlu1 %2227, %v2304_v20   ;;  %v764_v20 = vmul.f32 0.2, %v2898_v17  ;;  %v924_v63 = vsub.f32 0.0, %v860_v49 }
 0x148   : > { %1327 = vperm.xlu2 %2228, %v2306_v23   ;;  %v923_v23 = vsub.f32 0.0, %v859_v57  ;;  %v844_v57 = vsel %vm716_vm2, %v2902_v31, %v780_v14  ;;  %v2316_v14 = vpop.eup %2315  ;;  %2321 = vpow2.f32 %v1078_v50 }
 0x149   : > { %v828_v59 = vsel %vm700_vm1, %v2898_v17, %v764_v20  ;;  %v908_v4 = vsub.f32 0.0, %v844_v57  ;;  %v988_v49 = vmin.f32 %v924_v63, 80.0 }
 0x14a   : > { %1407 = vperm.xlu0 %2226, %v2308_v35   ;;  %v1208_v21 = vpop.permute.xlu2 %1207  ;;  %v940_v35 = vmin.f32 %v876_v58, 80.0  ;;  %v987_v48 = vmin.f32 %v923_v23, 80.0  ;;  %v892_v30 = vsub.f32 0.0, %v828_v59  ;;  %v765_v23 = vmul.f32 0.2, %v2916_v27  ;;  %v2318_v59 = vpop.eup %2317 }
 0x14b   : > { %v1457_v20 = vmul.f32 %v1208_v21, %v2676_v56  ;;  %v972_v57 = vmin.f32 %v908_v4, 80.0 }
 0x14c   : > { %v1016_v0 = vmul.f32 1.442695, %v940_v35  ;;  %v1110_v56 = vmul.f32 1.442695, %v987_v48  ;;  %v956_v21 = vmin.f32 %v892_v30, 80.0  ;;  %v829_v30 = vsel %vm701_vm5, %v2916_v27, %v765_v23  ;;  %v2947_v48 = vpop.f32.mrf.mxu1 }
 0x14d   : > { %v781_v35 = vmul.f32 0.2, %v2922_v9  ;;  %3182 = vst [vmem:[#allocation30_spill] sm:$0xff] %v2947_v48  ;;  %v893_v25 = vsub.f32 0.0, %v829_v30  ;;  %v1080_v31 = vmul.f32 1.442695, %v972_v57 }
 0x14e   : > { %2323 = vpow2.f32 %v1016_v0  ;;  %v1112_v0 = vmul.f32 1.442695, %v988_v49  ;;  %vm702_vm9 = vcmp.gt.f32.partialorder %v2947_v48, 0.0 }
 0x14f   : > { %1172 = vperm.xlu1 %2227, %v2310_v1   ;;  %2325 = vpow2.f32 %v1110_v56 }
 0x150   : > { %1252 = vperm.xlu2 %2228, %v2312_v22   ;;  %v749_v22 = vmul.f32 0.2, %v2918_v46 }
 0x152   : > { %1332 = vperm.xlu0 %2226, %v2314_v44   ;;  %v2927_v1 = vpop.permute.xlu2 %1372  ;;  %v2320_v44 = vpop.eup %2319 }
 0x153   : > { %v1203_v58 = vpop.permute.xlu1 %1202 }
 0x154   : > { %v1456_v17 = vmul.f32 %v1203_v58, %v2658_v42  ;;  %v2930_v2 = vpop.permute.xlu0 %1122  ;;  %v2943_v42 = vpop.f32.mrf.mxu0  ;;  %v1048_v58 = vmul.f32 1.442695, %v956_v21 }
 0x155   : > { %3181 = vst [vmem:[#allocation29_spill] sm:$0xff] %v2943_v42  ;;  %v750_v56 = vmul.f32 0.2, %v2943_v42  ;;  %v2322_v21 = vpop.eup %2321  ;;  %vm686_vm8 = vcmp.gt.f32.partialorder %v2943_v42, 0.0 }
 0x156   : > { %v1992_v24 = vpack.c.bf16 %v1457_v20, %v1456_v17  ;;  %v813_v17 = vsel %vm685_vm4, %v2918_v46, %v749_v22  ;;  %v845_v20 = vsel %vm717_vm6, %v2922_v9, %v781_v35  ;;  %2327 = vpow2.f32 %v1048_v58 }
 0x157   : > { %1412 = vperm.xlu1 %2227, %v2316_v14   ;;  %v2950_v14 = vpop.f32.mrf.mxu3  ;;  %v877_v50 = vsub.f32 0.0, %v813_v17  ;;  %v909_v63 = vsub.f32 0.0, %v845_v20  ;;  %v766_v35 = vmul.f32 0.2, %v2947_v48  ;;  %v957_v17 = vmin.f32 %v893_v25, 80.0 }
 0x158   : > { %2116 = vst [vmem:[%s2939_s15 + $0x40] sm:$0xff] %v1992_v24   ;;  %1177 = vperm.xlu2 %2228, %v2318_v59   ;;  %v2952_v24 = vpop.f32.mrf.mxu2  ;;  %v2324_v59 = vpop.eup %2323  ;;  %2329 = vpow2.f32 %v1080_v31  ;;  %v814_v20 = vsel %vm686_vm8, %v2943_v42, %v750_v56  ;;  %vm733_vm13 = vcmp.gt.f32.partialorder %v2950_v14, 0.0 }
 0x159   : > { %3183 = vst [vmem:[#allocation31_spill] sm:$0xff] %v2952_v24  ;;  %v782_v23 = vmul.f32 0.2, %v2952_v24  ;;  %vm718_vm7 = vcmp.gt.f32.partialorder %v2952_v24, 0.0  ;;  %v2326_v57 = vpop.eup %2325  ;;  %2331 = vpow2.f32 %v1112_v0  ;;  %v973_v49 = vmin.f32 %v909_v63, 80.0 }
 0x15a   : > { %1257 = vperm.xlu0 %2226, %v2320_v44   ;;  %v2954_v22 = vpop.permute.xlu2 %1297  ;;  %v941_v44 = vmin.f32 %v877_v50, 80.0  ;;  %v830_v25 = vsel %vm702_vm9, %v2947_v48, %v766_v35  ;;  %v1050_v0 = vmul.f32 1.442695, %v957_v17 }
 0x15b   : > { %v846_v30 = vsel %vm718_vm7, %v2952_v24, %v782_v23  ;;  %v2969_v23 = vpop.f32.mrf.mxu1 }
 0x15c   : > { %v1363_v4 = vpop.permute.xlu0 %1362  ;;  %v2964_v9 = vpop.f32.mrf.mxu0  ;;  %v910_v50 = vsub.f32 0.0, %v846_v30  ;;  %v1018_v31 = vmul.f32 1.442695, %v941_v44  ;;  %v767_v42 = vmul.f32 0.2, %v2969_v23  ;;  %vm703_vm10 = vcmp.gt.f32.partialorder %v2969_v23, 0.0 }
 0x15d   : > { %v1488_v46 = vmul.f32 %v1363_v4, %v2668_v52  ;;  %v878_v52 = vsub.f32 0.0, %v814_v20  ;;  %v751_v24 = vmul.f32 0.2, %v2964_v9  ;;  %vm687_vm11 = vcmp.gt.f32.partialorder %v2964_v9, 0.0 }
 0x15e   : > { %v974_v17 = vmin.f32 %v910_v50, 80.0  ;;  %2333 = vpow2.f32 %v1018_v31  ;;  %v797_v50 = vmul.f32 0.2, %v2950_v14 }
 0x15f   : > { %1337 = vperm.xlu1 %2227, %v2322_v21   ;;  %v2971_v21 = vpop.f32.mrf.mxu3  ;;  %2335 = vpow2.f32 %v1050_v0  ;;  %v1472_v0 = vmul.f32 %v2892_v36, %v2666_v51 }
 0x160   : > { %1417 = vperm.xlu2 %2228, %v2326_v57   ;;  %v1440_v57 = vmul.f32 %v2930_v2, %v2656_v41  ;;  %v2978_v30 = vpop.f32.mrf.mxu2  ;;  %v831_v2 = vsel %vm703_vm10, %v2969_v23, %v767_v42  ;;  %v1084_v20 = vmul.f32 1.442695, %v974_v17  ;;  %vm734_vm14 = vcmp.gt.f32.partialorder %v2971_v21, 0.0 }
 0x161   : > { %v1368_v58 = vpop.permute.xlu1 %1367  ;;  %vm719_vm12 = vcmp.gt.f32.partialorder %v2978_v30, 0.0  ;;  %v895_v42 = vsub.f32 0.0, %v831_v2  ;;  %v861_v36 = vsel %vm733_vm13, %v2950_v14, %v797_v50 }
 0x162   : > { %1182 = vperm.xlu0 %2226, %v2324_v59   ;;  %v1489_v27 = vmul.f32 %v1368_v58, %v2688_v8  ;;  %v2973_v63 = vpop.permute.xlu2 %1142  ;;  %v2328_v59 = vpop.eup %2327  ;;  %v1082_v8 = vmul.f32 1.442695, %v973_v49  ;;  %v894_v58 = vsub.f32 0.0, %v830_v25  ;;  %v815_v25 = vsel %vm687_vm11, %v2964_v9, %v751_v24 }
 0x163   : > { %v2330_v44 = vpop.eup %2329  ;;  %v925_v50 = vsub.f32 0.0, %v861_v36 }
 0x164   : > { %v1128_v56 = vpop.permute.xlu0 %1127  ;;  %v2072_v4 = vpack.c.bf16 %v1489_v27, %v1488_v46  ;;  %v2332_v41 = vpop.eup %2331  ;;  %v942_v27 = vmin.f32 %v878_v52, 80.0  ;;  %v958_v46 = vmin.f32 %v894_v58, 80.0  ;;  %2337 = vpow2.f32 %v1082_v8 }
 0x165   : > { %v1441_v35 = vmul.f32 %v1128_v56, %v2674_v55  ;;  %v783_v55 = vmul.f32 0.2, %v2978_v30  ;;  %2339 = vpow2.f32 %v1084_v20  ;;  %v798_v58 = vmul.f32 0.2, %v2971_v21 }
 0x166   : > { %2132 = vst [vmem:[%s2939_s15 + $0xc0] sm:$0xff] %v2072_v4   ;;  %v1052_v24 = vmul.f32 1.442695, %v958_v46  ;;  %v879_v4 = vsub.f32 0.0, %v815_v25  ;;  %v1475_v46 = vmul.f32 %v2954_v22, %v2724_v53 }
 0x167   : > { %v1952_v48 = vpack.c.bf16 %v1441_v35, %v1440_v57  ;;  %1262 = vperm.xlu1 %2227, %v2328_v59   ;;  %v847_v31 = vsel %vm719_vm12, %v2978_v30, %v783_v55  ;;  %v1020_v59 = vmul.f32 1.442695, %v942_v27  ;;  %v2999_v52 = vpop.f32.mrf.mxu3  ;;  %v2334_v35 = vpop.eup %2333  ;;  %v862_v20 = vsel %vm734_vm14, %v2971_v21, %v798_v58 }
 0x168   : > { %1342 = vperm.xlu2 %2228, %v2330_v44   ;;  %v911_v8 = vsub.f32 0.0, %v847_v31  ;;  %v2336_v17 = vpop.eup %2335  ;;  %v799_v51 = vmul.f32 0.2, %v2999_v52  ;;  %vm735_vm15 = vcmp.gt.f32.partialorder %v2999_v52, 0.0  ;;  %v943_v55 = vmin.f32 %v879_v4, 80.0 }
 0x169   : > { %1953 = vst [vmem:[%s2939_s15] sm:$0xff] %v1952_v48   ;;  %v2989_v49 = vpop.permute.xlu1 %1132  ;;  %2341 = vpow2.f32 %v1020_v59  ;;  %v926_v4 = vsub.f32 0.0, %v862_v20 }
 0x16a   : > { %1422 = vperm.xlu0 %2226, %v2332_v41   ;;  %v2994_v56 = vpop.permute.xlu2 %1222  ;;  %v959_v41 = vmin.f32 %v895_v42, 80.0  ;;  %2343 = vpow2.f32 %v1052_v24  ;;  %v975_v2 = vmin.f32 %v911_v8, 80.0  ;;  %v863_v31 = vsel %vm735_vm15, %v2999_v52, %v799_v51 }
 0x16b   : > { %v1444_v42 = vmul.f32 %v2973_v63, %v2730_v60  ;;  %v1022_v24 = vmul.f32 1.442695, %v943_v55  ;;  %v927_v58 = vsub.f32 0.0, %v863_v31  ;;  %v990_v51 = vmin.f32 %v926_v4, 80.0 }
 0x16c   : > { %v1288_v48 = vpop.permute.xlu0 %1287  ;;  %v1086_v8 = vmul.f32 1.442695, %v975_v2  ;;  %v1490_v55 = vmul.f32 %v2927_v1, %v2705_v29  ;;  %v1460_v4 = vmul.f32 %v2994_v56, %v2738_v12 }
 0x16d   : > { %v1473_v57 = vmul.f32 %v1288_v48, %v2686_v7  ;;  %v2338_v7 = vpop.eup %2337  ;;  %v991_v63 = vmin.f32 %v927_v58, 80.0  ;;  %v1116_v20 = vmul.f32 1.442695, %v990_v51 }
 0x16e   : > { %v2340_v59 = vpop.eup %2339 }
 0x16f   : > { %v2032_v44 = vpack.c.bf16 %v1473_v57, %v1472_v0  ;;  %1187 = vperm.xlu1 %2227, %v2334_v35   ;;  %v1054_v57 = vmul.f32 1.442695, %v959_v41  ;;  %v2342_v35 = vpop.eup %2341 }
 0x170   : > { %1267 = vperm.xlu2 %2228, %v2336_v17   ;;  %v989_v17 = vmin.f32 %v925_v50, 80.0  ;;  %v1118_v50 = vmul.f32 1.442695, %v991_v63 }
 0x171   : > { %2124 = vst [vmem:[%s2939_s15 + $0x80] sm:$0xff] %v2032_v44   ;;  %v1293_v27 = vpop.permute.xlu1 %1292  ;;  %v2344_v44 = vpop.eup %2343  ;;  %2345 = vpow2.f32 %v1054_v57 }
 0x172   : > { %1347 = vperm.xlu0 %2226, %v2338_v7   ;;  %v1474_v25 = vmul.f32 %v1293_v27, %v2703_v28  ;;  %v1148_v48 = vpop.permute.xlu2 %1147  ;;  %2347 = vpow2.f32 %v1022_v24  ;;  %v1114_v27 = vmul.f32 1.442695, %v989_v17 }
 0x173   : > { %v1445_v22 = vmul.f32 %v1148_v48, %v2752_v37  ;;  %2349 = vpow2.f32 %v1086_v8  ;;  %v1442_v37 = vmul.f32 %v2989_v49, %v2691_v10 }
 0x174   : > { %v1213_v0 = vpop.permute.xlu0 %1212  ;;  %v2037_v53 = vpack.c.bf16 %v1475_v46, %v1474_v25  ;;  %2351 = vpow2.f32 %v1114_v27 }
 0x175   : > { %v1962_v28 = vpack.c.bf16 %v1445_v22, %v1444_v42  ;;  %2353 = vpow2.f32 %v1116_v20  ;;  %v1458_v29 = vmul.f32 %v1213_v0, %v2693_v11 }
 0x176   : > { %2125 = vst [vmem:[%s2939_s15 + $0x88] sm:$0xff] %v2037_v53   ;;  %2355 = vpow2.f32 %v1118_v50 }
 0x177   : > { %1352 = vperm.xlu1 %2227, %v2340_v59   ;;  %2110 = vst [vmem:[%s2939_s15 + $0x10] sm:$0xff] %v1962_v28   ;;  %v2346_v25 = vpop.eup %2345 }
 0x178   : > { %1192 = vperm.xlu2 %2228, %v2342_v35   ;;  %v2348_v48 = vpop.eup %2347 }
 0x179   : > { %v1138_v60 = vpop.permute.xlu1 %1137  ;;  %v2350_v10 = vpop.eup %2349 }
 0x17a   : > { %1272 = vperm.xlu0 %2226, %v2344_v44   ;;  %v1443_v7 = vmul.f32 %v1138_v60, %v2710_v32  ;;  %v1388_v36 = vpop.permute.xlu2 %1387  ;;  %v2352_v42 = vpop.eup %2351 }
 0x17b   : > { %v2354_v57 = vpop.eup %2353  ;;  %v1493_v24 = vmul.f32 %v1388_v36, %v2770_v15 }
 0x17c   : > { %v1378_v41 = vpop.permute.xlu0 %1377  ;;  %v1957_v46 = vpack.c.bf16 %v1443_v7, %v1442_v37  ;;  %v2356_v53 = vpop.eup %2355 }
 0x17d   : > { %v1491_v2 = vmul.f32 %v1378_v41, %v2726_v54 }
 0x17e   : > { %2109 = vst [vmem:[%s2939_s15 + $0x8] sm:$0xff] %v1957_v46  }
 0x17f   : > { %v2077_v31 = vpack.c.bf16 %v1491_v2, %v1490_v55  ;;  %1277 = vperm.xlu1 %2227, %v2346_v25  }
 0x180   : > { %1357 = vperm.xlu2 %2228, %v2350_v10  }
 0x181   : > { %2133 = vst [vmem:[%s2939_s15 + $0xc8] sm:$0xff] %v2077_v31   ;;  %v1218_v32 = vpop.permute.xlu1 %1217 }
 0x182   : > { %1197 = vperm.xlu0 %2226, %v2348_v48   ;;  %v1459_v54 = vmul.f32 %v1218_v32, %v2715_v38  ;;  %v1313_v1 = vpop.permute.xlu2 %1312 }
 0x183   : > { %v1478_v55 = vmul.f32 %v1313_v1, %v2785_v40  ;;  %v3184_v1 = vld [vmem:[#allocation12_spill] sm:$0xff] }
 0x184   : > { %v1303_v49 = vpop.permute.xlu0 %1302  ;;  %v1997_v59 = vpack.c.bf16 %v1459_v54, %v1458_v29 }
 0x185   : > { %v1476_v44 = vmul.f32 %v1303_v49, %v2746_v26 }
 0x186   : > { %2117 = vst [vmem:[%s2939_s15 + $0x48] sm:$0xff] %v1997_v59  }
 0x187   : > { %1427 = vperm.xlu1 %2227, %v2352_v42  }
 0x188   : > { %1432 = vperm.xlu2 %2228, %v2354_v57   ;;  %v3186_v57 = vld [vmem:[#allocation13_spill] sm:$0xff] }
 0x189   : > { %v1383_v22 = vpop.permute.xlu1 %1382 }
 0x18a   : > { %1437 = vperm.xlu0 %2226, %v2356_v53   ;;  %v1492_v11 = vmul.f32 %v1383_v22, %v2754_v39  ;;  %v1238_v0 = vpop.permute.xlu2 %1237 }
 0x18b   : > { %v1463_v12 = vmul.f32 %v1238_v0, %v2800_v13  ;;  %v3188_v0 = vld [vmem:[#allocation14_spill] sm:$0xff] }
 0x18c   : > { %v1228_v38 = vpop.permute.xlu0 %1227  ;;  %v2082_v35 = vpack.c.bf16 %v1493_v24, %v1492_v11  ;;  %v3187_v24 = vld [vmem:[#allocation18_spill] sm:$0xff] }
 0x18d   : > { %v1461_v8 = vmul.f32 %v1228_v38, %v2757_v45 }
 0x18e   : > { %2134 = vst [vmem:[%s2939_s15 + $0xd0] sm:$0xff] %v2082_v35  }
 0x18f   : > { %v2002_v58 = vpack.c.bf16 %v1461_v8, %v1460_v4 }
 0x191   : > { %2118 = vst [vmem:[%s2939_s15 + $0x50] sm:$0xff] %v2002_v58   ;;  %v1308_v28 = vpop.permute.xlu1 %1307  ;;  %v3189_v58 = vld [vmem:[#allocation21_spill] sm:$0xff] }
 0x192   : > { %v1477_v15 = vmul.f32 %v1308_v28, %v2768_v5  ;;  %v1163_v17 = vpop.permute.xlu2 %1162 }
 0x193   : > { %v1448_v48 = vmul.f32 %v1163_v17, %v2814_v47 }
 0x194   : > { %v1153_v51 = vpop.permute.xlu0 %1152  ;;  %v2042_v39 = vpack.c.bf16 %v1477_v15, %v1476_v44  ;;  %v3190_v44 = vld [vmem:[#allocation17_spill] sm:$0xff] }
 0x195   : > { %v1446_v26 = vmul.f32 %v1153_v51, %v2773_v19  ;;  %v3191_v51 = vld [vmem:[#allocation15_spill] sm:$0xff] }
 0x196   : > { %2126 = vst [vmem:[%s2939_s15 + $0x90] sm:$0xff] %v2042_v39  }
 0x199   : > { %v1233_v60 = vpop.permute.xlu1 %1232 }
 0x19a   : > { %v1462_v45 = vmul.f32 %v1233_v60, %v2781_v33  ;;  %v1403_v56 = vpop.permute.xlu2 %1402 }
 0x19c   : > { %v1393_v37 = vpop.permute.xlu0 %1392  ;;  %v2007_v63 = vpack.c.bf16 %v1463_v12, %v1462_v45  ;;  %v3192_v12 = vld [vmem:[#allocation19_spill] sm:$0xff] }
 0x19d   : > { %v1494_v2 = vmul.f32 %v1393_v37, %v2792_v61 }
 0x19e   : > { %2119 = vst [vmem:[%s2939_s15 + $0x58] sm:$0xff] %v2007_v63   ;;  %v3193_v63 = vld [vmem:[#allocation16_spill] sm:$0xff] }
 0x1a1   : > { %v1158_v7 = vpop.permute.xlu1 %1157 }
 0x1a2   : > { %v1447_v5 = vmul.f32 %v1158_v7, %v2797_v6  ;;  %v1328_v36 = vpop.permute.xlu2 %1327 }
 0x1a3   : > { %v1481_v40 = vmul.f32 %v1328_v36, %v2844_v3 }
 0x1a4   : > { %v1318_v41 = vpop.permute.xlu0 %1317  ;;  %v1967_v27 = vpack.c.bf16 %v1447_v5, %v1446_v26  ;;  %v3194_v26 = vld [vmem:[#allocation20_spill] sm:$0xff] }
 0x1a5   : > { %v1479_v13 = vmul.f32 %v1318_v41, %v2802_v18 }
 0x1a6   : > { %2111 = vst [vmem:[%s2939_s15 + $0x18] sm:$0xff] %v1967_v27  }
 0x1a7   : > { %v2047_v46 = vpack.c.bf16 %v1479_v13, %v1478_v55  ;;  %v3195_v13 = vld [vmem:[#allocation26_spill] sm:$0xff] }
 0x1a9   : > { %2127 = vst [vmem:[%s2939_s15 + $0x98] sm:$0xff] %v2047_v46   ;;  %v1398_v33 = vpop.permute.xlu1 %1397 }
 0x1aa   : > { %v1495_v19 = vmul.f32 %v1398_v33, %v2811_v43  ;;  %v1253_v20 = vpop.permute.xlu2 %1252  ;;  %v3196_v33 = vld [vmem:[#allocation23_spill] sm:$0xff] }
 0x1ab   : > { %v1466_v39 = vmul.f32 %v1253_v20, %v3191_v51 }
 0x1ac   : > { %v1243_v25 = vpop.permute.xlu0 %1242  ;;  %v2087_v6 = vpack.c.bf16 %v1495_v19, %v1494_v2 }
 0x1ad   : > { %v1464_v54 = vmul.f32 %v1243_v25, %v2820_v62 }
 0x1ae   : > { %2135 = vst [vmem:[%s2939_s15 + $0xd8] sm:$0xff] %v2087_v6  }
 0x1b1   : > { %v1323_v50 = vpop.permute.xlu1 %1322 }
 0x1b2   : > { %v1480_v31 = vmul.f32 %v1323_v50, %v2826_v16  ;;  %v1178_v32 = vpop.permute.xlu2 %1177  ;;  %v3185_v16 = vld [vmem:[#allocation11_spill] sm:$0xff]  ;;  %v3197_v50 = vld [vmem:[#allocation22_spill] sm:$0xff] }
 0x1b3   : > { %v1496_v59 = vmul.f32 %v1403_v56, %v3185_v16  ;;  %v1451_v11 = vmul.f32 %v1178_v32, %v3187_v24  ;;  %v3201_v16 = vld [vmem:[#allocation31_spill] sm:$0xff] }
 0x1b4   : > { %v1168_v18 = vpop.permute.xlu0 %1167  ;;  %v2052_v10 = vpack.c.bf16 %v1481_v40, %v1480_v31  ;;  %v3198_v31 = vld [vmem:[#allocation27_spill] sm:$0xff] }
 0x1b5   : > { %v1449_v61 = vmul.f32 %v1168_v18, %v2833_v34 }
 0x1b6   : > { %2128 = vst [vmem:[%s2939_s15 + $0xa0] sm:$0xff] %v2052_v10   ;;  %v3199_v10 = vld [vmem:[#allocation24_spill] sm:$0xff] }
 0x1b7   : > { %v1972_v43 = vpack.c.bf16 %v1449_v61, %v1448_v48 }
 0x1b9   : > { %2112 = vst [vmem:[%s2939_s15 + $0x20] sm:$0xff] %v1972_v43   ;;  %v1248_v29 = vpop.permute.xlu1 %1247  ;;  %v3200_v43 = vld [vmem:[#allocation28_spill] sm:$0xff] }
 0x1ba   : > { %v1465_v3 = vmul.f32 %v1248_v29, %v3184_v1  ;;  %v1418_v22 = vpop.permute.xlu2 %1417 }
 0x1bb   : > { %v1499_v28 = vmul.f32 %v1418_v22, %v3189_v58 }
 0x1bc   : > { %v1408_v49 = vpop.permute.xlu0 %1407  ;;  %v2012_v42 = vpack.c.bf16 %v1465_v3, %v1464_v54 }
 0x1bd   : > { %v1497_v47 = vmul.f32 %v1408_v49, %v3186_v57 }
 0x1be   : > { %2120 = vst [vmem:[%s2939_s15 + $0x60] sm:$0xff] %v2012_v42  }
 0x1bf   : > { %v2092_v53 = vpack.c.bf16 %v1497_v47, %v1496_v59 }
 0x1c1   : > { %2136 = vst [vmem:[%s2939_s15 + $0xe0] sm:$0xff] %v2092_v53   ;;  %v1173_v34 = vpop.permute.xlu1 %1172  ;;  %v3202_v53 = vld [vmem:[#allocation30_spill] sm:$0xff] }
 0x1c2   : > { %v1450_v38 = vmul.f32 %v1173_v34, %v3188_v0  ;;  %v1343_v35 = vpop.permute.xlu2 %1342 }
 0x1c3   : > { %v1484_v61 = vmul.f32 %v1343_v35, %v3199_v10 }
 0x1c4   : > { %v1333_v62 = vpop.permute.xlu0 %1332  ;;  %v1977_v4 = vpack.c.bf16 %v1451_v11, %v1450_v38  ;;  %v3203_v11 = vld [vmem:[#allocation29_spill] sm:$0xff] }
 0x1c5   : > { %v1482_v7 = vmul.f32 %v1333_v62, %v3193_v63 }
 0x1c6   : > { %2113 = vst [vmem:[%s2939_s15 + $0x28] sm:$0xff] %v1977_v4  }
 0x1c9   : > { %v1413_v8 = vpop.permute.xlu1 %1412 }
 0x1ca   : > { %v1498_v15 = vmul.f32 %v1413_v8, %v3190_v44  ;;  %v1268_v36 = vpop.permute.xlu2 %1267 }
 0x1cb   : > { %v1469_v46 = vmul.f32 %v1268_v36, %v3195_v13 }
 0x1cc   : > { %v1258_v17 = vpop.permute.xlu0 %1257  ;;  %v2097_v60 = vpack.c.bf16 %v1499_v28, %v1498_v15 }
 0x1cd   : > { %v1467_v45 = vmul.f32 %v1258_v17, %v3192_v12 }
 0x1ce   : > { %2137 = vst [vmem:[%s2939_s15 + $0xe8] sm:$0xff] %v2097_v60  }
 0x1cf   : > { %v2017_v56 = vpack.c.bf16 %v1467_v45, %v1466_v39 }
 0x1d1   : > { %2121 = vst [vmem:[%s2939_s15 + $0x68] sm:$0xff] %v2017_v56   ;;  %v1338_v37 = vpop.permute.xlu1 %1337 }
 0x1d2   : > { %v1483_v5 = vmul.f32 %v1338_v37, %v3194_v26  ;;  %v1193_v25 = vpop.permute.xlu2 %1192 }
 0x1d3   : > { %v1454_v0 = vmul.f32 %v1193_v25, %v3203_v11 }
 0x1d4   : > { %v1183_v41 = vpop.permute.xlu0 %1182  ;;  %v2057_v55 = vpack.c.bf16 %v1483_v5, %v1482_v7 }
 0x1d5   : > { %v1452_v40 = vmul.f32 %v1183_v41, %v3197_v50 }
 0x1d6   : > { %2129 = vst [vmem:[%s2939_s15 + $0xa8] sm:$0xff] %v2057_v55  }
 0x1d9   : > { %v1263_v27 = vpop.permute.xlu1 %1262 }
 0x1da   : > { %v1468_v2 = vmul.f32 %v1263_v27, %v3196_v33  ;;  %v1358_v1 = vpop.permute.xlu2 %1357 }
 0x1db   : > { %v1487_v49 = vmul.f32 %v1358_v1, %v2978_v30 }
 0x1dc   : > { %v1423_v19 = vpop.permute.xlu0 %1422  ;;  %v2022_v20 = vpack.c.bf16 %v1469_v46, %v1468_v2 }
 0x1de   : > { %2122 = vst [vmem:[%s2939_s15 + $0x70] sm:$0xff] %v2022_v20  }
 0x1e1   : > { %v1188_v6 = vpop.permute.xlu1 %1187 }
 0x1e2   : > { %v1453_v18 = vmul.f32 %v1188_v6, %v3198_v31  ;;  %v1433_v4 = vpop.permute.xlu2 %1432 }
 0x1e3   : > { %v1502_v28 = vmul.f32 %v1433_v4, %v2971_v21 }
 0x1e4   : > { %v1348_v48 = vpop.permute.xlu0 %1347  ;;  %v1982_v32 = vpack.c.bf16 %v1453_v18, %v1452_v40 }
 0x1e5   : > { %v1485_v29 = vmul.f32 %v1348_v48, %v3200_v43 }
 0x1e6   : > { %2114 = vst [vmem:[%s2939_s15 + $0x30] sm:$0xff] %v1982_v32  }
 0x1e7   : > { %v2062_v54 = vpack.c.bf16 %v1485_v29, %v1484_v61 }
 0x1e9   : > { %2130 = vst [vmem:[%s2939_s15 + $0xb0] sm:$0xff] %v2062_v54   ;;  %v1353_v3 = vpop.permute.xlu1 %1352 }
 0x1ea   : > { %v1486_v59 = vmul.f32 %v1353_v3, %v3201_v16 }
 0x1ec   : > { %v1273_v42 = vpop.permute.xlu0 %1272  ;;  %v2067_v57 = vpack.c.bf16 %v1487_v49, %v1486_v59 }
 0x1ed   : > { %v1470_v22 = vmul.f32 %v1273_v42, %v3202_v53 }
 0x1ee   : > { %2131 = vst [vmem:[%s2939_s15 + $0xb8] sm:$0xff] %v2067_v57  }
 0x1f1   : > { %v1278_v47 = vpop.permute.xlu1 %1277 }
 0x1f2   : > { %v1471_v34 = vmul.f32 %v1278_v47, %v2969_v23  ;;  %v3204_v23 = vld [vmem:[#allocation25_spill] sm:$0xff] }
 0x1f3   : > { %v1500_v8 = vmul.f32 %v1423_v19, %v3204_v23 }
 0x1f4   : > { %v1198_v24 = vpop.permute.xlu0 %1197  ;;  %v2027_v38 = vpack.c.bf16 %v1471_v34, %v1470_v22 }
 0x1f5   : > { %v1455_v62 = vmul.f32 %v1198_v24, %v2964_v9 }
 0x1f6   : > { %2123 = vst [vmem:[%s2939_s15 + $0x78] sm:$0xff] %v2027_v38  }
 0x1f7   : > { %v1987_v30 = vpack.c.bf16 %v1455_v62, %v1454_v0 }
 0x1f9   : > { %2115 = vst [vmem:[%s2939_s15 + $0x38] sm:$0xff] %v1987_v30   ;;  %v1428_v35 = vpop.permute.xlu1 %1427 }
 0x1fa   : > { %v1501_v58 = vmul.f32 %v1428_v35, %v2950_v14 }
 0x1fc   : > { %v1438_v9 = vpop.permute.xlu0 %1437  ;;  %v2102_v44 = vpack.c.bf16 %v1501_v58, %v1500_v8 }
 0x1fd   : > { %v1503_v15 = vmul.f32 %v1438_v9, %v2999_v52 }
 0x1fe   : > { %2138 = vst [vmem:[%s2939_s15 + $0xf0] sm:$0xff] %v2102_v44  }
 0x1ff   : > { %v2107_v17 = vpack.c.bf16 %v1503_v15, %v1502_v28 }
 0x201   : > { %2139 = vst [vmem:[%s2939_s15 + $0xf8] sm:$0xff] %v2107_v17  }
 0x202   : > { %2444 = shalt.err (!%p2441_p10)
}
 0x203   : > { %s2493_s5 = smov 64   ;;  %s2494_s30 = smov 4  }
 0x204   : > { %2170 = dma.vmem_to_hbm [thread:$0]  (%p2578_p0), %s1646_s17, 4096, %s1648_s18, %s1633_s13, %s2493_s5, %s2493_s5, %s2494_s30  }
 0x205 PF: > { %p2187_p11 = scmp.ge.s32.totalorder %s2487_s12, 2  ;;  %s1662_s6 = sand.u32 1, %s2475_s9  }
 0x206   : > { %s1663_s7 = scalar_lea.sflag [#allocation4], %s1662_s6 }
 0x207   : > { %p2181_p12 = pnand %p2187_p11, %p2545_p6 }
 0x209   : > { %p2182_p13 = pneg %p2181_p12 }
 0x20b   : > { %2470 = dma.done.wait (%p2182_p13), %s1663_s7, 4096  }
 0x20c   : > { %2472 = vsyncadd (%p2182_p13), %s1663_s7, 4294963200  ;;  %p16_p3 = scmp.ge.s32.totalorder %s2562_s23, 5   ;;  %s3205_s9 = smov %s2479_s10 }
 0x20d   : > { %s3206_s10 = smov %s2483_s11  ;;  %s3207_s11 = smov %s2574_s28 }
 0x20e   : > { %s3208_s12 = smov %s2562_s23  ;;  %18 = sbr.rel (!%p16_p3) target bundleno = 6 (0x6), region = 77 }
 0x213   :  { %1669 = vsyncpa [#allocation3], 1 }
 0x214   :  { %1671 = vsyncpa [#allocation3 + $0x1], 1 }
 0x215   :  { %1672 = vsyncpa [#allocation6], 1 }
 0x216   :  { %1673 = vsyncpa [#allocation4], 1 }
 0x217   :  { %1675 = vsyncpa [#allocation4 + $0x1], 1 }

</bundles_post_ra>
